<compile_context>
chip_gen: v6e
topology: v6e:2x2x1
jax: 0.10.0
libtpu: 0.0.40
codegen_flags: <defaults>
</compile_context>

<pallas_src>
import jax
import jax.numpy as jnp
from jax import lax
from jax.experimental import pallas as pl
from jax.experimental.pallas import tpu as pltpu


C_PAD = 128   # lane-dense channel padding (one MXU tile; keep 128 on v5e)
RS = 8        # output rows per grid step (sublane-aligned strip)


# -----------------------------------------------------------------------------
# Pallas kernel: one fused 3x3 conv (pad already applied host-side) + bias + SiLU
# -----------------------------------------------------------------------------
def fused_repconv_kernel(x_ref, w_ref, b_ref, o_ref):
    # x_ref: (H+2, W+2, Cp) bf16 zero-padded NHWC image (batch squeezed; resident across strips)
    # w_ref: (3, 3*Cp, Cp)  bf16 fused weights, rows ordered (dy, ci) for each dx
    # b_ref: (1, Cp)        f32 fused bias (sum of the three BN shifts)
    # o_ref: (RS, W, Cp)    f32 output strip
    rs, W, Cp = o_ref.shape
    s = pl.program_id(1)
    h0 = pl.multiple_of(s * rs, rs)

    # one load of the strip (+2 halo rows); all 9 taps are carved from it in-vreg
    xs = x_ref[pl.ds(h0, rs + 2), :, :]                       # (rs+2, W+2, Cp) bf16

    acc = None
    for dx in range(3):
        # single (possibly sublane-misaligned) column shift per dx, hoisted out of dy
        slab = xs[:, dx:dx + W, :]                             # (rs+2, W, Cp)
        # stack the 3 row-shifted windows along K so the MXU owns the dy accumulation
        op = jnp.concatenate(
            [slab[dy:dy + rs].reshape(rs * W, Cp) for dy in range(3)],
            axis=-1)                                           # (rs*W, 3*Cp) bf16
        d = jnp.dot(op, w_ref[dx], preferred_element_type=jnp.float32)  # (rs*W, Cp) f32
        acc = d if acc is None else acc + d

    z = acc + b_ref[...]                                       # f32 bias
    z = z * jax.nn.sigmoid(z)                                  # SiLU (EUP)
    # aligned, full-lane, unmasked store
    o_ref[...] = z.reshape(rs, W, Cp).astype(o_ref.dtype)


# -----------------------------------------------------------------------------
# Wrapper: host-side layout prep + pallas_call
# -----------------------------------------------------------------------------
def repconv_forward(x_nchw, w_eff, bias, c_pad=C_PAD, rs=RS):
    N, c_in, H, W = x_nchw.shape
    c_out = bias.shape[0]
    assert H % rs == 0, "kernel processes sublane-aligned row strips"
    assert c_in <= c_pad and c_out <= c_pad

    # NCHW -> NHWC, spatial zero-pad of 1 (halo baked into the block, no scratch),
    # lane-dense channel pad, bf16 MXU operands.  (Keep NHWC end-to-end in a real
    # graph to drop these transposes entirely.)
    x = jnp.transpose(x_nchw, (0, 2, 3, 1))
    x = jnp.pad(x, ((0, 0), (1, 1), (1, 1), (0, c_pad - c_in))).astype(jnp.bfloat16)

    # fused weights (kh, kw, Cin, Cout) -> (dx, dy*Cp + ci, co), matching the kernel's
    # K-concatenation order, bf16
    w = jnp.pad(w_eff, ((0, 0), (0, 0), (0, c_pad - c_in), (0, c_pad - c_out)))
    w = jnp.transpose(w, (1, 0, 2, 3)).reshape(3, 3 * c_pad, c_pad).astype(jnp.bfloat16)
    b = jnp.pad(bias, (0, c_pad - c_out)).reshape(1, c_pad).astype(jnp.float32)

    n_strips = H // rs
    flops = 2 * N * H * W * 9 * c_pad * c_pad
    bytes_accessed = (x.size * 2 + w.size * 2 + b.size * 4
                      + N * H * W * c_pad * 4)

    out = pl.pallas_call(
        fused_repconv_kernel,
        out_shape=jax.ShapeDtypeStruct((N, H, W, c_pad), jnp.float32),
        grid_spec=pltpu.PrefetchScalarGridSpec(
            num_scalar_prefetch=0,
            grid=(N, n_strips),            # >1 step per TC on v7x; pipelining on v5e/v6e
            in_specs=[
                pl.BlockSpec((None, H + 2, W + 2, c_pad), lambda n, s: (n, 0, 0, 0)),
                pl.BlockSpec((3, 3 * c_pad, c_pad), lambda n, s: (0, 0, 0)),
                pl.BlockSpec((1, c_pad), lambda n, s: (0, 0)),
            ],
            out_specs=pl.BlockSpec((None, rs, W, c_pad), lambda n, s: (n, s, 0, 0)),
        ),
        compiler_params=pltpu.CompilerParams(
            dimension_semantics=("parallel", "parallel")),
        cost_estimate=pl.CostEstimate(
            flops=flops,
            transcendentals=N * H * W * c_pad,
            bytes_accessed=bytes_accessed),
    )(x, w, b)

    # drop channel padding, back to NCHW (one fused XLA slice+transpose under jit)
    return jnp.transpose(out[..., :c_out], (0, 3, 1, 2))


# -----------------------------------------------------------------------------
# Host-side RepConv re-parameterization (torch OIHW weights + eval-mode BN ->
# single 3x3 kernel in (kh, kw, Cin, Cout) layout + bias)
# -----------------------------------------------------------------------------
def fuse_repconv_params(tp, eps=1e-5):
    def fold(bnp):
        g, b, m, v = bnp
        s = g / jnp.sqrt(v + eps)
        return s, b - m * s

    s1, sh1 = fold(tp['bn1'])
    s2, sh2 = fold(tp['bn2'])
    s3, sh3 = fold(tp['bn3'])

    w1 = tp['w1'][:, :, 0, 0]        # (O, C)
    w2a = tp['w2a'][:, :, 0, 0]      # (D, C)   (D == O)
    w2b = tp['w2b']                  # (O, D, 3, 3)
    w3 = tp['w3'][:, :, 0, 0]        # (O, C)

    # branch 2: 1x1 followed by 3x3 composes into a single 3x3
    k2 = jnp.einsum('odhw,dc->hwco', w2b, w2a)          # (3, 3, C, O)
    w_eff = s2 * k2
    # branch 3: 1x1 followed by 3x3 avg-pool (count_include_pad) == uniform taps of w3/9
    w_eff = w_eff + (s3 / 9.0) * w3.T                   # broadcast over (kh, kw)
    # branch 1: 1x1 == center tap only
    w_eff = w_eff.at[1, 1].add(s1 * w1.T)

    bias = sh1 + sh2 + sh3
    return w_eff.astype(jnp.float32), bias.astype(jnp.float32)


# -----------------------------------------------------------------------------
# Deterministic parameter construction (torch OIHW layout + BN stats)
# -----------------------------------------------------------------------------
def make_torch_params(key, c_in, c_out):
    ks = jax.random.split(key, 8)
    w1 = jax.random.normal(ks[0], (c_out, c_in, 1, 1), jnp.float32) * 0.2
    w2a = jax.random.normal(ks[1], (c_out, c_in, 1, 1), jnp.float32) * 0.2
    w2b = jax.random.normal(ks[2], (c_out, c_out, 3, 3), jnp.float32) * 0.1
    w3 = jax.random.normal(ks[3], (c_out, c_in, 1, 1), jnp.float32) * 0.2

    def bn(k):
        k0, k1, k2, k3 = jax.random.split(k, 4)
        gamma = jax.random.uniform(k0, (c_out,), jnp.float32, 0.5, 1.5)
        beta = jax.random.normal(k1, (c_out,), jnp.float32) * 0.1
        mean = jax.random.normal(k2, (c_out,), jnp.float32) * 0.1
        var = jax.random.uniform(k3, (c_out,), jnp.float32, 0.5, 1.5)
        return gamma, beta, mean, var

    return dict(w1=w1, w2a=w2a, w2b=w2b, w3=w3,
                bn1=bn(ks[4]), bn2=bn(ks[5]), bn3=bn(ks[6]))


# -----------------------------------------------------------------------------
# Pure-JAX reference of the ORIGINAL (unfused) module forward, for validation
# -----------------------------------------------------------------------------
def ref_forward_nchw(x, tp, eps=1e-5):
    dn = ('NCHW', 'OIHW', 'NCHW')

    def conv(x_, w, pad):
        return lax.conv_general_dilated(x_, w, (1, 1), [(pad, pad), (pad, pad)],
                                        dimension_numbers=dn)

    def bn(x_, bnp):
        g, b, m, v = bnp
        s = g / jnp.sqrt(v + eps)
        sh = b - m * s
        return x_ * s[None, :, None, None] + sh[None, :, None, None]

    y1 = bn(conv(x, tp['w1'], 0), tp['bn1'])
    y2 = bn(conv(conv(x, tp['w2a'], 0), tp['w2b'], 1), tp['bn2'])
    t = conv(x, tp['w3'], 0)
    pooled = lax.reduce_window(t, 0.0, lax.add, (1, 1, 3, 3), (1, 1, 1, 1),
                               [(0, 0), (0, 0), (1, 1), (1, 1)]) / 9.0
    y3 = bn(pooled, tp['bn3'])
    z = y1 + y2 + y3
    return z * jax.nn.sigmoid(z)


if __name__ == "__main__":
    N, C_IN, C_OUT, H, W = 2, 4, 8, 16, 16
    key = jax.random.PRNGKey(0)
    k_x, k_p = jax.random.split(key)

    x_nchw = jax.random.normal(k_x, (N, C_IN, H, W), jnp.float32)
    tp = make_torch_params(k_p, C_IN, C_OUT)

    # host-side RepConv fold: three branches -> one 3x3 conv + bias
    w_eff, bias = fuse_repconv_params(tp)

    out_nchw = jax.jit(repconv_forward)(x_nchw, w_eff, bias)
    out_nchw = jax.block_until_ready(out_nchw)

    ref = ref_forward_nchw(x_nchw, tp)
    assert out_nchw.shape == ref.shape == (N, C_OUT, H, W)
    max_err = float(jnp.max(jnp.abs(out_nchw - ref)))
    # bf16 MXU operands with f32 accumulation: loosened tolerance vs. the f32 reference
    assert jnp.allclose(out_nchw, ref, rtol=5e-2, atol=5e-2), max_err

    print("KERNEL_OK")
</pallas_src>

<mosaic_0001>
module attributes {stable_mosaic.version = 11 : i64} {
  func.func @fused_repconv_kernel(%arg0: i32, %arg1: i32, %arg2: memref<1x18x18x128xbf16, #tpu.memory_space<vmem>>, %arg3: memref<3x384x128xbf16, #tpu.memory_space<vmem>>, %arg4: memref<1x128xf32, #tpu.memory_space<vmem>>, %arg5: memref<1x8x16x128xf32, #tpu.memory_space<vmem>>) attributes {dimension_semantics = [#tpu.dimension_semantics<parallel>, #tpu.dimension_semantics<parallel>], iteration_bounds = array<i64: 2, 2>, scalar_prefetch = 0 : i64, scratch_operands = 0 : i64, tpu.core_type = #tpu.core_type<tc>, window_params = [{transform_indices = @transform_0, window_bounds = array<i64: 1, 18, 18, 128>}, {pipeline_mode = #tpu.pipeline_mode<synchronous>, transform_indices = @transform_1, window_bounds = array<i64: 3, 384, 128>}, {pipeline_mode = #tpu.pipeline_mode<synchronous>, transform_indices = @transform_2, window_bounds = array<i64: 1, 128>}, {transform_indices = @transform_3, window_bounds = array<i64: 1, 8, 16, 128>}]} {
    %c8_i32 = arith.constant 8 : i32
    %0 = arith.muli %arg1, %c8_i32 : i32
    %1 = tpu.assume_multiple %0, 8 : i32
    %c0 = arith.constant 0 : index
    %2 = arith.index_cast %1 : i32 to index
    %c0_0 = arith.constant 0 : index
    %c0_1 = arith.constant 0 : index
    %3 = vector.load %arg2[%c0, %2, %c0_0, %c0_1] : memref<1x18x18x128xbf16, #tpu.memory_space<vmem>>, vector<1x10x18x128xbf16>
    %4 = vector.shape_cast %3 : vector<1x10x18x128xbf16> to vector<10x18x128xbf16>
    %5 = vector.extract_strided_slice %4 {offsets = [0, 0, 0], sizes = [10, 16, 128], strides = [1, 1, 1]} : vector<10x18x128xbf16> to vector<10x16x128xbf16>
    %6 = vector.extract_strided_slice %5 {offsets = [0, 0, 0], sizes = [8, 16, 128], strides = [1, 1, 1]} : vector<10x16x128xbf16> to vector<8x16x128xbf16>
    %7 = vector.shape_cast %6 : vector<8x16x128xbf16> to vector<128x128xbf16>
    %8 = vector.extract_strided_slice %5 {offsets = [1, 0, 0], sizes = [8, 16, 128], strides = [1, 1, 1]} : vector<10x16x128xbf16> to vector<8x16x128xbf16>
    %9 = vector.shape_cast %8 : vector<8x16x128xbf16> to vector<128x128xbf16>
    %10 = vector.extract_strided_slice %5 {offsets = [2, 0, 0], sizes = [8, 16, 128], strides = [1, 1, 1]} : vector<10x16x128xbf16> to vector<8x16x128xbf16>
    %11 = vector.shape_cast %10 : vector<8x16x128xbf16> to vector<128x128xbf16>
    %12 = tpu.concatenate %7, %9, %11 in 1 : vector<128x128xbf16>, vector<128x128xbf16>, vector<128x128xbf16> -> vector<128x384xbf16>
    %c0_2 = arith.constant 0 : index
    %c0_3 = arith.constant 0 : index
    %c0_4 = arith.constant 0 : index
    %13 = vector.load %arg3[%c0_2, %c0_3, %c0_4] : memref<3x384x128xbf16, #tpu.memory_space<vmem>>, vector<1x384x128xbf16>
    %14 = vector.shape_cast %13 : vector<1x384x128xbf16> to vector<384x128xbf16>
    %cst = arith.constant dense<0.000000e+00> : vector<128x128xf32>
    %15 = tpu.matmul %12, %14, %cst {dimension_numbers = #tpu.dot_dimension_numbers<[1], [0], [0], [1], [0, 0, 1, 1], [], []>} : vector<128x384xbf16>, vector<384x128xbf16>, vector<128x128xf32> -> vector<128x128xf32>
    %16 = vector.extract_strided_slice %4 {offsets = [0, 1, 0], sizes = [10, 16, 128], strides = [1, 1, 1]} : vector<10x18x128xbf16> to vector<10x16x128xbf16>
    %17 = vector.extract_strided_slice %16 {offsets = [0, 0, 0], sizes = [8, 16, 128], strides = [1, 1, 1]} : vector<10x16x128xbf16> to vector<8x16x128xbf16>
    %18 = vector.shape_cast %17 : vector<8x16x128xbf16> to vector<128x128xbf16>
    %19 = vector.extract_strided_slice %16 {offsets = [1, 0, 0], sizes = [8, 16, 128], strides = [1, 1, 1]} : vector<10x16x128xbf16> to vector<8x16x128xbf16>
    %20 = vector.shape_cast %19 : vector<8x16x128xbf16> to vector<128x128xbf16>
    %21 = vector.extract_strided_slice %16 {offsets = [2, 0, 0], sizes = [8, 16, 128], strides = [1, 1, 1]} : vector<10x16x128xbf16> to vector<8x16x128xbf16>
    %22 = vector.shape_cast %21 : vector<8x16x128xbf16> to vector<128x128xbf16>
    %23 = tpu.concatenate %18, %20, %22 in 1 : vector<128x128xbf16>, vector<128x128xbf16>, vector<128x128xbf16> -> vector<128x384xbf16>
    %c1 = arith.constant 1 : index
    %c0_5 = arith.constant 0 : index
    %c0_6 = arith.constant 0 : index
    %24 = vector.load %arg3[%c1, %c0_5, %c0_6] : memref<3x384x128xbf16, #tpu.memory_space<vmem>>, vector<1x384x128xbf16>
    %25 = vector.shape_cast %24 : vector<1x384x128xbf16> to vector<384x128xbf16>
    %cst_7 = arith.constant dense<0.000000e+00> : vector<128x128xf32>
    %26 = tpu.matmul %23, %25, %cst_7 {dimension_numbers = #tpu.dot_dimension_numbers<[1], [0], [0], [1], [0, 0, 1, 1], [], []>} : vector<128x384xbf16>, vector<384x128xbf16>, vector<128x128xf32> -> vector<128x128xf32>
    %27 = arith.addf %15, %26 : vector<128x128xf32>
    %28 = vector.extract_strided_slice %4 {offsets = [0, 2, 0], sizes = [10, 16, 128], strides = [1, 1, 1]} : vector<10x18x128xbf16> to vector<10x16x128xbf16>
    %29 = vector.extract_strided_slice %28 {offsets = [0, 0, 0], sizes = [8, 16, 128], strides = [1, 1, 1]} : vector<10x16x128xbf16> to vector<8x16x128xbf16>
    %30 = vector.shape_cast %29 : vector<8x16x128xbf16> to vector<128x128xbf16>
    %31 = vector.extract_strided_slice %28 {offsets = [1, 0, 0], sizes = [8, 16, 128], strides = [1, 1, 1]} : vector<10x16x128xbf16> to vector<8x16x128xbf16>
    %32 = vector.shape_cast %31 : vector<8x16x128xbf16> to vector<128x128xbf16>
    %33 = vector.extract_strided_slice %28 {offsets = [2, 0, 0], sizes = [8, 16, 128], strides = [1, 1, 1]} : vector<10x16x128xbf16> to vector<8x16x128xbf16>
    %34 = vector.shape_cast %33 : vector<8x16x128xbf16> to vector<128x128xbf16>
    %35 = tpu.concatenate %30, %32, %34 in 1 : vector<128x128xbf16>, vector<128x128xbf16>, vector<128x128xbf16> -> vector<128x384xbf16>
    %c2 = arith.constant 2 : index
    %c0_8 = arith.constant 0 : index
    %c0_9 = arith.constant 0 : index
    %36 = vector.load %arg3[%c2, %c0_8, %c0_9] : memref<3x384x128xbf16, #tpu.memory_space<vmem>>, vector<1x384x128xbf16>
    %37 = vector.shape_cast %36 : vector<1x384x128xbf16> to vector<384x128xbf16>
    %cst_10 = arith.constant dense<0.000000e+00> : vector<128x128xf32>
    %38 = tpu.matmul %35, %37, %cst_10 {dimension_numbers = #tpu.dot_dimension_numbers<[1], [0], [0], [1], [0, 0, 1, 1], [], []>} : vector<128x384xbf16>, vector<384x128xbf16>, vector<128x128xf32> -> vector<128x128xf32>
    %39 = arith.addf %27, %38 : vector<128x128xf32>
    %c0_11 = arith.constant 0 : index
    %c0_12 = arith.constant 0 : index
    %40 = vector.load %arg4[%c0_11, %c0_12] : memref<1x128xf32, #tpu.memory_space<vmem>>, vector<1x128xf32>
    %41 = vector.broadcast %40 : vector<1x128xf32> to vector<128x128xf32>
    %42 = arith.addf %39, %41 : vector<128x128xf32>
    %43 = arith.negf %42 : vector<128x128xf32>
    %44 = math.exp %43 : vector<128x128xf32>
    %cst_13 = arith.constant 1.000000e+00 : f32
    %45 = vector.broadcast %cst_13 : f32 to vector<128x128xf32>
    %46 = arith.addf %45, %44 : vector<128x128xf32>
    %47 = arith.divf %45, %46 : vector<128x128xf32>
    %48 = arith.mulf %42, %47 : vector<128x128xf32>
    %49 = vector.shape_cast %48 : vector<128x128xf32> to vector<8x16x128xf32>
    %c0_14 = arith.constant 0 : index
    %c0_15 = arith.constant 0 : index
    %c0_16 = arith.constant 0 : index
    %c0_17 = arith.constant 0 : index
    %50 = vector.load %arg5[%c0_14, %c0_15, %c0_16, %c0_17] : memref<1x8x16x128xf32, #tpu.memory_space<vmem>>, vector<1x8x16x128xf32>
    %51 = vector.shape_cast %50 : vector<1x8x16x128xf32> to vector<8x16x128xf32>
    %52 = vector.shape_cast %49 : vector<8x16x128xf32> to vector<1x8x16x128xf32>
    tpu.vector_store %arg5[%c0_14, %c0_15, %c0_16, %c0_17], %52 {strides = array<i32>} : memref<1x8x16x128xf32, #tpu.memory_space<vmem>>, vector<1x8x16x128xf32>,
    return
  }
  func.func @transform_0(%arg0: i32, %arg1: i32) -> (i32, i32, i32, i32) {
    %c0_i32 = arith.constant 0 : i32
    %c0_i32_0 = arith.constant 0 : i32
    %c0_i32_1 = arith.constant 0 : i32
    %c0_i32_2 = arith.constant 0 : i32
    return %arg0, %c0_i32, %c0_i32_0, %c0_i32_1 : i32, i32, i32, i32
  }
  func.func @transform_1(%arg0: i32, %arg1: i32) -> (i32, i32, i32) {
    %c0_i32 = arith.constant 0 : i32
    %c0_i32_0 = arith.constant 0 : i32
    %c0_i32_1 = arith.constant 0 : i32
    %c0_i32_2 = arith.constant 0 : i32
    return %c0_i32, %c0_i32_0, %c0_i32_1 : i32, i32, i32
  }
  func.func @transform_2(%arg0: i32, %arg1: i32) -> (i32, i32) {
    %c0_i32 = arith.constant 0 : i32
    %c0_i32_0 = arith.constant 0 : i32
    %c0_i32_1 = arith.constant 0 : i32
    return %c0_i32, %c0_i32_0 : i32, i32
  }
  func.func @transform_3(%arg0: i32, %arg1: i32) -> (i32, i32, i32, i32) {
    %c0_i32 = arith.constant 0 : i32
    %c0_i32_0 = arith.constant 0 : i32
    %c0_i32_1 = arith.constant 0 : i32
    return %arg0, %arg1, %c0_i32, %c0_i32_0 : i32, i32, i32, i32
  }
}

</mosaic_0001>

<bundles_post_ra>
// kernel: repconv_forward.1
= control target key start
LH: loop header
LB: loop body
LE: loop exit
PB: predicated region body
PF: predicated region fallthrough
CT: control target
= control target key end

     0   :  { %s2940_s12 = smov 0   ;;  %s2942_s13 = smov 0   ;;  %s3908_s0 = inlined_call_operand.vmem [shape: bf16[2,18,18,128], index: 0, kind: input, shape index: {}]   ;;  %s3909_s1 = inlined_call_operand.vmem [shape: bf16[3,384,128], index: 1, kind: input, shape index: {}]   ;;  %s3910_s2 = inlined_call_operand.vmem [shape: f32[1,128], index: 2, kind: input, shape index: {}]   ;;  %s3911_s3 = inlined_call_operand.vmem [shape: f32[2,16,16,128], index: 3, kind: output, shape index: {}]  }
   0x1   :  { %s2944_s14 = smov 0   ;;  %s2946_s15 = smov 0  }
   0x2   :  { %s2948_s16 = smov 0  }
   0x3 LB: > { %s22_s17 = sadd.s32 1, %s2910_s14  ;;  %s25_s18 = sadd.s32 1, %s2914_s15  ;;  %s2918_s16 = sphi %s2948_s16, %s13_s16   ;;  %s2914_s15 = sphi %s2946_s15, %s3950_s15   ;;  %s2910_s14 = sphi %s2944_s14, %s3949_s14   ;;  %s2906_s13 = sphi %s2942_s13, %s3948_s13   ;;  %s2902_s12 = sphi %s2940_s12, %s3947_s12  }
   0x4   : > { %p23_p0 = scmp.ge.s32.totalorder %s22_s17, 2  ;;  %p2120_p1 = scmp.ge.s32.totalorder %s2918_s16, 1 }
   0x5   : > { %p151_p2 = scmp.lt.s32.totalorder %s2918_s16, 5 }
   0x6   : > { %s3952_s17 = smov (%p23_p0, %s22_s17), 0  ;;  %s3954_s18 = smov (!%p23_p0, %s25_s18), %s2914_s15 }
   0x7   : > { %p152_p3 = pnand %p2120_p1, %p151_p2  ;;  %p27_p4 = scmp.ge.s32.totalorder %s3954_s18, 2 }
   0x9   : > { %s3956_s18 = smov (%p27_p4, %s3954_s18), 0  ;;  %155 = sbr.rel (%p152_p3) target bundleno = 445 (0x1bd), region = 32 }
   0xe   : > { %v2734_v0 = vld [vmem:[%s3909_s1 + $0x138] sm:$0xff]   ;;  %v2737_v3 = vld [vmem:[%s3909_s1 + $0x130] sm:$0xff]   ;;  %v2740_v6 = vld [vmem:[%s3909_s1 + $0x128] sm:$0xff]   ;;  %p180_p5 = scmp.lt.s32.totalorder %s2906_s13, 1  ;;  %s2356_s7 = smul.u32 96, %s2902_s12  ;;  %vm1355_vm3 = vcmask 1042432  }
   0xf   : > { %v2735_v1 = vld [vmem:[%s3909_s1 + $0x178] sm:$0xff]   ;;  %2357 = vmatprep.subr.bf16.mxu0 %v2734_v0  ;;  %v2738_v4 = vld [vmem:[%s3909_s1 + $0x170] sm:$0xff]   ;;  %v2741_v7 = vld [vmem:[%s3909_s1 + $0x168] sm:$0xff]   ;;  %vm339_vm0 = vsmask.f32 3328  ;;  %vm1356_vm4 = vcmask 1046532  }
  0x10   : > { %v2736_v2 = vld [vmem:[%s3909_s1 + $0xf8] sm:$0xff]   ;;  %2597 = vmatprep.subr.bf16.mxu1 %v2735_v1  ;;  %v2739_v5 = vld [vmem:[%s3909_s1 + $0xf0] sm:$0xff]   ;;  %v2742_v8 = vld [vmem:[%s3909_s1 + $0xe8] sm:$0xff]   ;;  %s3958_s13 = smov (!%p180_p5, %s2906_s13), 1  ;;  %vm340_vm1 = vsmask.f32 7440 }
  0x11   : > { %2358 = vmatpush3.bf16.msra.mxu0 %v2736_v2  ;;  %2598 = vmatpush3.bf16.msra.mxu1 %v2735_v1  ;;  %v2743_v9 = vld [vmem:[%s3909_s1 + $0x120] sm:$0xff]   ;;  %v2746_v12 = vld [vmem:[%s3909_s1 + $0x118] sm:$0xff]   ;;  %s2693_s27 = smul.u32 216, %s3958_s13  ;;  %v2749_v15 = vld [vmem:[%s3909_s1 + $0x110] sm:$0xff]   ;;  %s2122_s5 = sshll.u32 %s2902_s12, 3 }
  0x12   : > { %2359 = vmatprep.subr.bf16.mxu0 %v2737_v3  ;;  %2599 = vmatprep.subr.bf16.mxu1 %v2738_v4  ;;  %v2744_v10 = vld [vmem:[%s3909_s1 + $0x160] sm:$0xff]   ;;  %v2747_v13 = vld [vmem:[%s3909_s1 + $0x158] sm:$0xff]   ;;  %v2750_v16 = vld [vmem:[%s3909_s1 + $0x150] sm:$0xff]   ;;  %p3786_p6 = scmp.lt.s32.totalorder %s2122_s5, 15 }
  0x13   : > { %v2745_v11 = vld [vmem:[%s3909_s1 + $0xe0] sm:$0xff]   ;;  %v2748_v14 = vld [vmem:[%s3909_s1 + $0xd8] sm:$0xff]   ;;  %s184_s10 = scalar_lea.vmem %s3908_s0, %s2693_s27  ;;  %v2751_v17 = vld [vmem:[%s3909_s1 + $0xd0] sm:$0xff]  }
  0x14   : > { %v2752_v18 = vld [vmem:[%s3909_s1 + $0x108] sm:$0xff]   ;;  %s3043_s24 = scalar_lea.vmem %s184_s10, %s2356_s7  ;;  %v2755_v21 = vld [vmem:[%s3909_s1 + $0x100] sm:$0xff]   ;;  %v2758_v46 = vld [vmem:[%s3909_s1 + $0x78] sm:$0xff]   ;;  %s3960_s5 = smov (!%p3786_p6, %s2122_s5), 15 }
  0x15   : > { %2360 = vmatpush3.bf16.msra.mxu0 %v2739_v5  ;;  %2600 = vmatpush3.bf16.msra.mxu1 %v2738_v4  ;;  %v2753_v19 = vld [vmem:[%s3909_s1 + $0x148] sm:$0xff]   ;;  %v2756_v22 = vld [vmem:[%s3909_s1 + $0x140] sm:$0xff]   ;;  %v3058_v24 = vld [vmem:[%s3043_s24 + $0x10] sm:$0xf]  ;;  %s2123_s12 = sshll.u32 %s3960_s5, 1  ;;  %s2124_s7 = sshll.u32 %s3958_s13, 5 }
  0x16   : > { %2361 = vmatprep.subr.bf16.mxu0 %v2740_v6  ;;  %2601 = vmatprep.subr.bf16.mxu1 %v2741_v7  ;;  %v2754_v20 = vld [vmem:[%s3909_s1 + $0xc8] sm:$0xff]   ;;  %v3061_v25 = vld [vmem:[%s3043_s24 + $0x14] sm:$0x1]  ;;  %v2757_v28 = vld [vmem:[%s3909_s1 + $0xc0] sm:$0xff]   ;;  %v376_v29 = vshll.u32 %v3058_v24, 16  ;;  %v380_v30 = vshrl.u32 %v3058_v24, 16  ;;  %s192_s13 = sadd.s32 %s2124_s7, %s2123_s12 }
  0x17   : > { %v3055_v23 = vld [vmem:[%s3043_s24 + $0xc] sm:$0xf]  ;;  %v386_v31 = vshll.u32 %v3061_v25, 16  ;;  %v3072_v32 = vld [vmem:[%s3043_s24 + $0x18] sm:$0xf]  ;;  %vm3097_vm2 = vmor %vm339_vm0, %vm340_vm1  ;;  %s2125_s8 = sshll.u32 %s192_s13, 3 }
  0x18   : > { %v367_v26 = vshrl.u32 %v3055_v23, 16  ;;  %v370_v27 = vshll.u32 %v3055_v23, 16  ;;  %v3075_v35 = vld [vmem:[%s3043_s24 + $0x1c] sm:$0xf]  ;;  %v3078_v36 = vld [vmem:[%s3043_s24 + $0x20] sm:$0x1]  ;;  %vm3351_vm5 = vmor %vm1355_vm3, %vm1356_vm4  ;;  %s3837_s11 = scalar_lea.vmem %s3911_s3, %s2125_s8 }
  0x19   : > { %2362 = vmatpush3.bf16.msra.mxu0 %v2742_v8  ;;  %2602 = vmatpush3.bf16.msra.mxu1 %v2741_v7  ;;  %v378_v37 = vrot.slane %v376_v29, 5  ;;  %v382_v38 = vrot.slane %v380_v30, 4  ;;  %v388_v39 = vrot.slane %v386_v31, 5  ;;  %v391_v40 = vshrl.u32 %v3072_v32, 16  ;;  %v3082_v41 = vld [vmem:[%s3043_s24] sm:$0xf] }
  0x1a   : > { %2363 = vmatprep.subr.bf16.mxu0 %v2743_v9  ;;  %2603 = vmatprep.subr.bf16.mxu1 %v2744_v10  ;;  %v369_v33 = vrot.slane %v367_v26, 4  ;;  %v372_v34 = vrot.slane %v370_v27, 5  ;;  %v394_v43 = vshll.u32 %v3072_v32, 16  ;;  %v400_v44 = vshll.u32 %v3075_v35, 16  ;;  %v3093_v47 = vld [vmem:[%s3909_s1 + $0xb8] sm:$0xff]   ;;  %v2786_v48 = vld [vmem:[%s3909_s1 + $0x80] sm:$0xff]  }
  0x1b   : > { %v404_v45 = vshrl.u32 %v3075_v35, 16  ;;  %v383_v49 = vor.u32 %v382_v38, %v378_v37  ;;  %v393_v50 = vrot.slane %v391_v40, 4  ;;  %v410_v51 = vshll.u32 %v3078_v36, 16  ;;  %v3103_v52 = vld [vmem:[%s3043_s24 + $0x4] sm:$0xf] }
  0x1c   : > { %v373_v42 = vor.u32 %v372_v34, %v369_v33  ;;  %v343_v53 = vshrl.u32 %v3082_v41, 16  ;;  %v396_v55 = vrot.slane %v394_v43, 5  ;;  %v402_v56 = vrot.slane %v400_v44, 5  ;;  %v3107_v58 = vld [vmem:[%s3043_s24 + $0x8] sm:$0x1] }
  0x1d   : > { %2364 = vmatpush3.bf16.msra.mxu0 %v2745_v11  ;;  %2604 = vmatpush3.bf16.msra.mxu1 %v2744_v10  ;;  %v406_v57 = vrot.slane %v404_v45, 4  ;;  %v384_v59 = vrot.slane %v383_v49, 4  ;;  %v412_v60 = vrot.slane %v410_v51, 5  ;;  %v346_v62 = vshll.u32 %v3082_v41, 16  ;;  %v3111_v63 = vld [vmem:[%s3043_s24 + $0x24] sm:$0xf] }
  0x1e   : > { %2365 = vmatprep.subr.bf16.mxu0 %v2746_v12  ;;  %2605 = vmatprep.subr.bf16.mxu1 %v2747_v13  ;;  %v374_v54 = vrot.slane %v373_v42, 4  ;;  %v345_v61 = vrot.slane %v343_v53, 4  ;;  %v397_v1 = vor.u32 %v396_v55, %v393_v50  ;;  %v352_v3 = vshll.u32 %v3103_v52, 16  ;;  %v3117_v4 = vld [vmem:[%s3043_s24 + $0x28] sm:$0xf]  ;;  %v2764_v51 = vld [vmem:[%s3909_s1 + $0xb0] sm:$0xff]  }
  0x1f   : > { %v407_v2 = vor.u32 %v406_v57, %v402_v56  ;;  %v389_v5 = vsel %vm3097_vm2, %v384_v59, %v388_v39  ;;  %v348_v6 = vrot.slane %v346_v62, 5  ;;  %v356_v7 = vshrl.u32 %v3103_v52, 16  ;;  %v3145_v42 = vld [vmem:[%s3043_s24 + $0x30] sm:$0xf]  ;;  %v3148_v43 = vld [vmem:[%s3043_s24 + $0x34] sm:$0xf] }
  0x20   : > { %v379_v0 = vsel %vm3097_vm2, %v374_v54, %v378_v37  ;;  %v362_v8 = vshll.u32 %v3107_v58, 16  ;;  %v398_v10 = vrot.slane %v397_v1, 4  ;;  %v354_v12 = vrot.slane %v352_v3, 5  ;;  %v3153_v45 = vld [vmem:[%s3043_s24 + $0x38] sm:$0x1] }
  0x21   : > { %2366 = vmatpush3.bf16.msra.mxu0 %v2748_v14  ;;  %2606 = vmatpush3.bf16.msra.mxu1 %v2747_v13  ;;  %v3124_v9 = vcombine.low %v379_v0, %v389_v5  ;;  %v408_v11 = vrot.slane %v407_v2, 4  ;;  %v349_v13 = vor.u32 %v348_v6, %v345_v61  ;;  %v358_v14 = vrot.slane %v356_v7, 4  ;;  %v3163_v57 = vld [vmem:[%s3043_s24 + $0x3c] sm:$0xf]  ;;  %v3166_v59 = vld [vmem:[%s3043_s24 + $0x40] sm:$0xf] }
  0x22   : > { %2367 = vmatprep.subr.bf16.mxu0 %v2749_v15  ;;  %2607 = vmatprep.subr.bf16.mxu1 %v2750_v16  ;;  %v364_v15 = vrot.slane %v362_v8, 5  ;;  %v424_v27 = vshll.u32 %v3117_v4, 16  ;;  %v428_v30 = vshrl.u32 %v3117_v4, 16  ;;  %v442_v49 = vshll.u32 %v3145_v42, 16  ;;  %v3170_v1 = vld [vmem:[%s3043_s24 + $0x44] sm:$0x1] }
  0x23   : > { %847 = vmatprep.mubr.bf16.mxu0 %v3124_v9  ;;  %v359_v26 = vor.u32 %v358_v14, %v354_v12  ;;  %v448_v50 = vshll.u32 %v3148_v43, 16  ;;  %v458_v0 = vshll.u32 %v3153_v45, 16  ;;  %v2760_v5 = vld [vmem:[%s3909_s1 + $0x38] sm:$0xff]   ;;  %v463_v7 = vshrl.u32 %v3163_v57, 16  ;;  %v2761_v8 = vld [vmem:[%s3909_s1 + $0x70] sm:$0xff]  }
  0x24   : > { %v426_v37 = vrot.slane %v424_v27, 5  ;;  %v430_v39 = vrot.slane %v428_v30, 4  ;;  %v444_v61 = vrot.slane %v442_v49, 5  ;;  %v2762_v27 = vld [vmem:[%s3909_s1 + $0x30] sm:$0xff]   ;;  %v482_v30 = vshll.u32 %v3170_v1, 16 }
  0x25   : > { %2368 = vmatpush3.bf16.msra.mxu0 %v2751_v17  ;;  %2608 = vmatpush3.bf16.msra.mxu1 %v2750_v16  ;;  %v3127_v16 = vld [vmem:[%s3043_s24 + $0x2c] sm:$0x1]  ;;  %v403_v17 = vsel %vm3097_vm2, %v398_v10, %v402_v56  ;;  %v360_v34 = vrot.slane %v359_v26, 4  ;;  %v452_v56 = vshrl.u32 %v3148_v43, 16  ;;  %v450_v62 = vrot.slane %v448_v50, 5 }
  0x26   : > { %2369 = vmatprep.subr.bf16.mxu0 %v2752_v18  ;;  %2609 = vmatprep.subr.bf16.mxu1 %v2753_v19  ;;  %v413_v18 = vsel %vm3097_vm2, %v408_v11, %v412_v60  ;;  %v434_v31 = vshll.u32 %v3127_v16, 16  ;;  %v431_v55 = vor.u32 %v430_v39, %v426_v37  ;;  %v460_v11 = vrot.slane %v458_v0, 5  ;;  %v2769_v26 = vld [vmem:[%s3909_s1 + $0xa8] sm:$0xff]   ;;  %v3214_v50 = vld [vmem:[%s3043_s24 + $0x50] sm:$0x1] }
  0x27   : > { %v365_v44 = vsel %vm3097_vm2, %v360_v34, %v364_v15  ;;  %v454_v6 = vrot.slane %v452_v56, 4  ;;  %v2763_v39 = vld [vmem:[%s3909_s1 + $0x68] sm:$0xff]   ;;  %v506_v0 = vshll.u32 %v3214_v50, 16 }
  0x28   : > { %v436_v40 = vrot.slane %v434_v31, 5  ;;  %v432_v3 = vrot.slane %v431_v55, 4  ;;  %v3211_v49 = vld [vmem:[%s3043_s24 + $0x4c] sm:$0xf] }
  0x29   : > { %2370 = vmatpush3.bf16.msra.mxu0 %v2754_v20  ;;  %2610 = vmatpush3.bf16.msra.mxu1 %v2753_v19  ;;  %v415_v19 = vshrl.u32 %v3111_v63, 16  ;;  %v418_v20 = vshll.u32 %v3111_v63, 16  ;;  %v455_v15 = vor.u32 %v454_v6, %v450_v62  ;;  %v496_v55 = vshll.u32 %v3211_v49, 16  ;;  %v2765_v6 = vld [vmem:[%s3909_s1 + $0x28] sm:$0xff]  }
  0x2a   : > { %2371 = vmatprep.subr.bf16.mxu0 %v2755_v21  ;;  %2611 = vmatprep.subr.bf16.mxu1 %v2756_v22  ;;  %v3136_v21 = vcombine.low %v403_v17, %v413_v18  ;;  %v437_v14 = vsel %vm3097_vm2, %v432_v3, %v436_v40  ;;  %v465_v17 = vrot.slane %v463_v7, 4  ;;  %v476_v18 = vshrl.u32 %v3166_v59, 16  ;;  %v3206_v40 = vld [vmem:[%s3043_s24 + $0x48] sm:$0xf] }
  0x2b   : > { %v420_v29 = vrot.slane %v418_v20, 5  ;;  %v500_v56 = vshrl.u32 %v3211_v49, 16  ;;  %v3237_v3 = vcombine.low %v3206_v40, %v3211_v49 }
  0x2c   : > { %2613 = vmatprep.mubr.bf16.mxu1 %v3136_v21 }
  0x2d   : > { %2372 = vmatpush3.bf16.msra.mxu0 %v2757_v28  ;;  %2612 = vmatpush3.bf16.msra.mxu1 %v2756_v22  ;;  %v350_v22 = vrot.slane %v349_v13, 4  ;;  %v417_v28 = vrot.slane %v415_v19, 4  ;;  %v472_v13 = vshll.u32 %v3166_v59, 16 }
  0x2e   : > { %2437 = vmatprep.subr.bf16.mxu1 %v2758_v46  ;;  %2629 = vmatprep.subr.bf16.mxu0 %v3093_v47  ;;  %v439_v46 = vshrl.u32 %v3145_v42, 16 }
  0x2f   : > { %v355_v33 = vsel %vm3097_vm2, %v350_v22, %v354_v12  ;;  %v421_v38 = vor.u32 %v420_v29, %v417_v28  ;;  %v466_v12 = vshll.u32 %v3163_v57, 16  ;;  %v474_v22 = vrot.slane %v472_v13, 5 }
  0x30   : > { %v2139_v53 = vcombine.low %v355_v33, %v365_v44  ;;  %v441_v60 = vrot.slane %v439_v46, 4  ;;  %v456_v28 = vrot.slane %v455_v15, 4  ;;  %v478_v29 = vrot.slane %v476_v18, 4 }
  0x31   : > { %v422_v54 = vrot.slane %v421_v38, 4  ;;  %v468_v20 = vrot.slane %v466_v12, 5  ;;  %v484_v38 = vrot.slane %v482_v30, 5  ;;  %v2766_v12 = vld [vmem:[%s3909_s1 + $0x60] sm:$0xff]   ;;  %v508_v13 = vrot.slane %v506_v0, 5  ;;  %v2771_v0 = vld [vmem:[%s3909_s1 + $0x50] sm:$0xff]  }
  0x32   : > { %848 = vmatmul.mubr.bf16.vlgmr.msra.gmra.mxu0 %v2139_v53  ;;  %v445_v10 = vor.u32 %v444_v61, %v441_v60  ;;  %v461_v34 = vsel %vm3097_vm2, %v456_v28, %v460_v11  ;;  %v3222_v60 = vld [vmem:[%s3043_s24 + $0x54] sm:$0xf] }
  0x33   : > { %v427_v2 = vsel %vm3097_vm2, %v422_v54, %v426_v37  ;;  %2630 = vmatpush3.bf16.msra.mxu0 %v3093_v47  ;;  %855 = vmatprep.mubr.bf16.mxu0 %v3136_v21  ;;  %v469_v33 = vor.u32 %v468_v20, %v465_v17  ;;  %v479_v37 = vor.u32 %v478_v29, %v474_v22  ;;  %v490_v54 = vshll.u32 %v3206_v40, 16  ;;  %v2767_v17 = vld [vmem:[%s3909_s1 + $0x20] sm:$0xff]  }
  0x34   : > { %2631 = vmatprep.subr.bf16.mxu0 %v2764_v51  ;;  %v3188_v47 = vcombine.low %v427_v2, %v437_v14  ;;  %v446_v19 = vrot.slane %v445_v10, 4  ;;  %v3233_v2 = vld [vmem:[%s3043_s24 + $0x5c] sm:$0x1]  ;;  %v502_v10 = vrot.slane %v500_v56, 4  ;;  %v511_v14 = vshrl.u32 %v3222_v60, 16  ;;  %v2774_v29 = vld [vmem:[%s3909_s1 + $0xa0] sm:$0xff]  }
  0x35   : > { %v470_v46 = vrot.slane %v469_v33, 4  ;;  %v480_v53 = vrot.slane %v479_v37, 4  ;;  %v492_v7 = vrot.slane %v490_v54, 5  ;;  %v514_v15 = vshll.u32 %v3222_v60, 16  ;;  %v3277_v56 = vld [vmem:[%s3043_s24 + $0x60] sm:$0xf] }
  0x36   : > { %2614 = vmatmul.mubr.bf16.vlgmr.msra.gmra.mxu1 %v3188_v47  ;;  %v451_v31 = vsel %vm3097_vm2, %v446_v19, %v450_v62  ;;  %v530_v28 = vshll.u32 %v3233_v2, 16 }
  0x37   : > { %2632 = vmatpush3.bf16.msra.mxu0 %v2764_v51  ;;  %2438 = vmatpush3.bf16.msra.mxu1 %v2760_v5  ;;  %v3208_v44 = vcombine.low %v451_v31, %v461_v34  ;;  %v487_v51 = vshrl.u32 %v3206_v40, 16  ;;  %v475_v61 = vsel %vm3097_vm2, %v470_v46, %v474_v22  ;;  %v485_v5 = vsel %vm3097_vm2, %v480_v53, %v484_v38  ;;  %v2768_v46 = vld [vmem:[%s3909_s1 + $0x58] sm:$0xff]  }
  0x38   : > { %2633 = vmatprep.subr.bf16.mxu0 %v2769_v26  ;;  %2439 = vmatprep.subr.bf16.mxu1 %v2761_v8  ;;  %v498_v8 = vrot.slane %v496_v55, 5  ;;  %v3244_v11 = vcombine.low %v475_v61, %v485_v5  ;;  %v2770_v55 = vld [vmem:[%s3909_s1 + $0x18] sm:$0xff]   ;;  %v3286_v5 = vld [vmem:[%s3043_s24 + $0x64] sm:$0xf] }
  0x39   : > { %2617 = vmatprep.mubr.bf16.mxu1 %v3208_v44  ;;  %v489_v62 = vrot.slane %v487_v51, 4 }
  0x3a   : > { %856 = vmatmul.mubr.bf16.gmra.mxu0 %v3124_v9  ;;  %v3230_v9 = vld [vmem:[%s3043_s24 + $0x58] sm:$0xf]  ;;  %v503_v19 = vor.u32 %v502_v10, %v498_v8  ;;  %v544_v10 = vshll.u32 %v3286_v5, 16 }
  0x3b   : > { %863 = vmatprep.mubr.bf16.mxu0 %v3188_v47  ;;  %2440 = vmatpush3.bf16.msra.mxu1 %v2762_v27  ;;  %v493_v18 = vor.u32 %v492_v7, %v489_v62  ;;  %v520_v20 = vshll.u32 %v3230_v9, 16  ;;  %v524_v22 = vshrl.u32 %v3230_v9, 16  ;;  %v516_v27 = vrot.slane %v514_v15, 5 }
  0x3c   : > { %2634 = vmatpush3.bf16.msra.mxu0 %v2769_v26  ;;  %2441 = vmatprep.subr.bf16.mxu1 %v2763_v39  ;;  %v513_v26 = vrot.slane %v511_v14, 4  ;;  %v3263_v30 = vcombine.low %v3222_v60, %v3230_v9  ;;  %v504_v33 = vrot.slane %v503_v19, 4  ;;  %v532_v39 = vrot.slane %v530_v28, 5  ;;  %v3303_v19 = vld [vmem:[%s3043_s24 + $0x70] sm:$0xf] }
  0x3d   : > { %v494_v31 = vrot.slane %v493_v18, 4  ;;  %v522_v34 = vrot.slane %v520_v20, 5  ;;  %v526_v37 = vrot.slane %v524_v22, 4  ;;  %2635 = vmatprep.subr.bf16.mxu0 %v2774_v29  ;;  %v2772_v22 = vld [vmem:[%s3909_s1 + $0x10] sm:$0xff]  }
  0x3e   : > { %2618 = vmatmul.mubr.bf16.gmra.mxu1 %v3244_v11  ;;  %v517_v38 = vor.u32 %v516_v27, %v513_v26  ;;  %v509_v53 = vsel %vm3097_vm2, %v504_v33, %v508_v13  ;;  %v3296_v13 = vld [vmem:[%s3043_s24 + $0x6c] sm:$0xf]  ;;  %v546_v27 = vrot.slane %v544_v10, 5 }
  0x3f   : > { %2442 = vmatpush3.bf16.msra.mxu1 %v2765_v6  ;;  %v499_v51 = vsel %vm3097_vm2, %v494_v31, %v498_v8  ;;  %v527_v54 = vor.u32 %v526_v37, %v522_v34  ;;  %v535_v6 = vshrl.u32 %v3277_v56, 16  ;;  %v538_v8 = vshll.u32 %v3277_v56, 16  ;;  %v2773_v37 = vld [vmem:[%s3909_s1 + $0x48] sm:$0xff]  }
  0x40   : > { %2443 = vmatprep.subr.bf16.mxu1 %v2766_v12  ;;  %v3279_v61 = vcombine.low %v499_v51, %v509_v53  ;;  %v518_v62 = vrot.slane %v517_v38, 4  ;;  %2636 = vmatpush3.bf16.msra.mxu0 %v2774_v29  ;;  %v548_v12 = vshrl.u32 %v3286_v5, 16  ;;  %v559_v33 = vshrl.u32 %v3296_v13, 16 }
  0x41   : > { %v528_v7 = vrot.slane %v527_v54, 4  ;;  %v537_v15 = vrot.slane %v535_v6, 4  ;;  %v540_v26 = vrot.slane %v538_v8, 5  ;;  %v572_v51 = vshrl.u32 %v3303_v19, 16  ;;  %v2780_v6 = vld [vmem:[%s3909_s1 + $0x98] sm:$0xff]  }
  0x42   : > { %864 = vmatmul.mubr.bf16.gmra.mxu0 %v3136_v21  ;;  %v3289_v21 = vld [vmem:[%s3043_s24 + $0x68] sm:$0x1]  ;;  %2621 = vmatprep.mubr.bf16.mxu1 %v3279_v61  ;;  %v523_v14 = vsel %vm3097_vm2, %v518_v62, %v522_v34  ;;  %v550_v28 = vrot.slane %v548_v12, 4  ;;  %v562_v34 = vshll.u32 %v3296_v13, 16  ;;  %v561_v53 = vrot.slane %v559_v33, 4 }
  0x43   : > { %871 = vmatprep.mubr.bf16.mxu0 %v3208_v44  ;;  %2444 = vmatpush3.bf16.msra.mxu1 %v2767_v17  ;;  %v554_v18 = vshll.u32 %v3289_v21, 16  ;;  %v3306_v17 = vld [vmem:[%s3043_s24 + $0x74] sm:$0x1]  ;;  %v533_v20 = vsel %vm3097_vm2, %v528_v7, %v532_v39  ;;  %v541_v38 = vor.u32 %v540_v26, %v537_v15  ;;  %v574_v12 = vrot.slane %v572_v51, 4 }
  0x44   : > { %2445 = vmatprep.subr.bf16.mxu1 %v2768_v46  ;;  %v3313_v29 = vcombine.low %v523_v14, %v533_v20  ;;  %v551_v39 = vor.u32 %v550_v28, %v546_v27  ;;  %v568_v46 = vshll.u32 %v3303_v19, 16  ;;  %v564_v54 = vrot.slane %v562_v34, 5  ;;  %2637 = vmatprep.subr.bf16.mxu0 %v2780_v6  ;;  %v2782_v20 = vld [vmem:[%s3909_s1 + $0x90] sm:$0xff]  }
  0x45   : > { %v556_v31 = vrot.slane %v554_v18, 5  ;;  %v578_v62 = vshll.u32 %v3306_v17, 16  ;;  %v542_v7 = vrot.slane %v541_v38, 4  ;;  %v2776_v18 = vld [vmem:[%s3909_s1 + $0x40] sm:$0xff]   ;;  %2638 = vmatpush3.bf16.msra.mxu0 %v2780_v6  ;;  %v2784_v38 = vld [vmem:[%s3909_s1 + $0x88] sm:$0xff]   ;;  %v2246_v51 = vrot.slane %v3055_v23, 9 }
  0x46   : > { %2622 = vmatmul.mubr.bf16.gmra.mxu1 %v3313_v29  ;;  %v552_v8 = vrot.slane %v551_v39, 4  ;;  %v570_v10 = vrot.slane %v568_v46, 5  ;;  %v565_v14 = vor.u32 %v564_v54, %v561_v53  ;;  %2639 = vmatprep.subr.bf16.mxu0 %v2782_v20  ;;  %v3365_v46 = vcombine.low %v3055_v23, %v3058_v24 }
  0x47   : > { %2446 = vmatpush3.bf16.msra.mxu1 %v2770_v55  ;;  %v2138_v55 = vcombine.low %v3296_v13, %v3303_v19  ;;  %v580_v15 = vrot.slane %v578_v62, 5  ;;  %v1367_v54 = vrot.slane %v3058_v24, 5  ;;  %v2790_v62 = vld [vmem:[%s3909_s1 + $0x238] sm:$0xff]   ;;  %v1370_v6 = vrot.slane %v3061_v25, 5 }
  0x48   : > { %2447 = vmatprep.subr.bf16.mxu1 %v2771_v0  ;;  %v2775_v0 = vld [vmem:[%s3909_s1 + $0x8] sm:$0xff]   ;;  %v557_v26 = vsel %vm3097_vm2, %v552_v8, %v556_v31  ;;  %v575_v28 = vor.u32 %v574_v12, %v570_v10  ;;  %v566_v34 = vrot.slane %v565_v14, 4  ;;  %v2245_v24 = vrot.slane %v3082_v41, 9 }
  0x49   : > { %2640 = vmatpush3.bf16.msra.mxu0 %v2782_v20  ;;  %v1368_v23 = vsel %vm3351_vm5, %v2246_v51, %v1367_v54  ;;  %v1360_v25 = vrot.slane %v3103_v52, 5  ;;  %v2129_v14 = vcombine.low %v3082_v41, %v3103_v52  ;;  %v1374_v20 = vrot.slane %v3075_v35, 5 }
  0x4a   : > { %872 = vmatmul.mubr.bf16.gmra.mxu0 %v3188_v47  ;;  %v547_v47 = vsel %vm3097_vm2, %v542_v7, %v546_v27  ;;  %v576_v39 = vrot.slane %v575_v28, 4  ;;  %v571_v27 = vsel %vm3097_vm2, %v566_v34, %v570_v10  ;;  %2641 = vmatprep.subr.bf16.mxu0 %v2784_v38  ;;  %v1369_v7 = vrot.slane %v1367_v54, 4  ;;  %v2788_v10 = vld [vmem:[%s3909_s1 + $0x1f8] sm:$0xff]   ;;  %v2800_v54 = vld [vmem:[%s3909_s1 + $0x220] sm:$0xff]  }
  0x4b   : > { %879 = vmatprep.mubr.bf16.mxu0 %v3244_v11  ;;  %2448 = vmatpush3.bf16.msra.mxu1 %v2772_v22  ;;  %v3344_v33 = vcombine.low %v547_v47, %v557_v26  ;;  %v2793_v47 = vld [vmem:[%s3909_s1 + $0x230] sm:$0xff]   ;;  %v1377_v41 = vrot.slane %v3078_v36, 5  ;;  %v1376_v52 = vrot.slane %v1374_v20, 4  ;;  %v2248_v28 = vrot.slane %v3111_v63, 9  ;;  %v2815_v22 = vld [vmem:[%s3909_s1 + $0x200] sm:$0xff]  }
  0x4c   : > { %2449 = vmatprep.subr.bf16.mxu1 %v2773_v37  ;;  %v581_v31 = vsel %vm3097_vm2, %v576_v39, %v580_v15  ;;  %v2777_v37 = vld [vmem:[%s3909_s1] sm:$0xff]   ;;  %v1371_v8 = vsel %vm3351_vm5, %v1369_v7, %v1370_v6  ;;  %v1362_v15 = vrot.slane %v1360_v25, 4  ;;  %v1384_v34 = vrot.slane %v3127_v16, 5 }
  0x4d   : > { %2625 = vmatprep.mubr.bf16.mxu1 %v3344_v33  ;;  %v2148_v53 = vcombine.low %v571_v27, %v581_v31  ;;  %2642 = vmatpush3.bf16.msra.mxu0 %v2784_v38  ;;  %v3389_v12 = vcombine.low %v1368_v23, %v1371_v8  ;;  %v1378_v36 = vsel %vm3351_vm5, %v1376_v52, %v1377_v41  ;;  %v2797_v38 = vld [vmem:[%s3909_s1 + $0x228] sm:$0xff]   ;;  %v2249_v27 = vrot.slane %v3145_v42, 9 }
  0x4e   : > { %2643 = vmatprep.subr.bf16.mxu0 %v2786_v48  ;;  %v3434_v51 = vcombine.low %v3111_v63, %v3117_v4  ;;  %v2250_v63 = vrot.slane %v3163_v57, 9  ;;  %v2133_v8 = vcombine.low %v3145_v42, %v3148_v43 }
  0x4f   : > { %2450 = vmatpush3.bf16.msra.mxu1 %v2775_v0  ;;  %v2247_v0 = vrot.slane %v3072_v32, 9 }
  0x50   : > { %2451 = vmatprep.subr.bf16.mxu1 %v2776_v18  ;;  %2626 = vmatmul.mubr.bf16.gmra.mxu1 %v2148_v53  ;;  %v3400_v18 = vcombine.low %v3072_v32, %v3075_v35 }
  0x51   : > { %1185 = vmatprep.mubr.bf16.mxu1 %v3365_v46  ;;  %2644 = vmatpush3.bf16.msra.mxu0 %v2786_v48  ;;  %v1375_v35 = vsel %vm3351_vm5, %v2247_v0, %v1374_v20  ;;  %v1391_v48 = vrot.slane %v3153_v45, 5  ;;  %v1395_v45 = vrot.slane %v3166_v59, 5  ;;  %v1405_v0 = vrot.slane %v3214_v50, 5 }
  0x52   : > { %880 = vmatmul.mubr.bf16.gmra.mxu0 %v3208_v44  ;;  %v1363_v44 = vrot.slane %v3107_v58, 5  ;;  %v3396_v58 = vsel %vm3351_vm5, %v2245_v24, %v1360_v25  ;;  %2517 = vmatprep.subr.bf16.mxu0 %v2788_v10  ;;  %v3426_v39 = vcombine.low %v1375_v35, %v1378_v36  ;;  %v1398_v24 = vrot.slane %v3170_v1, 5 }
  0x53   : > { %887 = vmatprep.mubr.bf16.mxu0 %v3279_v61  ;;  %2452 = vmatpush3.bf16.msra.mxu1 %v2777_v37  ;;  %v1388_v37 = vrot.slane %v3148_v43, 5  ;;  %v1402_v10 = vrot.slane %v3211_v49, 5  ;;  %v1412_v49 = vrot.slane %v3233_v2, 5  ;;  %v2253_v20 = vrot.slane %v3277_v56, 9 }
  0x54   : > { %2661 = vmatprep.subr.bf16.mxu1 %v2790_v62  ;;  %v3408_v26 = vsel %vm3351_vm5, %v1362_v15, %v1363_v44  ;;  %v2251_v44 = vrot.slane %v3206_v40, 9  ;;  %v1409_v15 = vrot.slane %v3230_v9, 5  ;;  %v2807_v40 = vld [vmem:[%s3909_s1 + $0x210] sm:$0xff]   ;;  %v1417_v9 = vrot.slane %v3286_v5, 5 }
  0x55   : > { %v2255_v32 = vcombine.low %v3396_v58, %v3408_v26  ;;  %v1389_v6 = vsel %vm3351_vm5, %v2249_v27, %v1388_v37  ;;  %v1390_v23 = vrot.slane %v1388_v37, 4  ;;  %v1404_v43 = vrot.slane %v1402_v10, 4  ;;  %v2789_v27 = vld [vmem:[%s3909_s1 + $0x1b8] sm:$0xff]  }
  0x56   : > { %v1403_v42 = vsel %vm3351_vm5, %v2251_v44, %v1402_v10  ;;  %v2254_v2 = vrot.slane %v3296_v13, 9  ;;  %v1425_v35 = vrot.slane %v3303_v19, 5  ;;  %v2134_v37 = vcombine.low %v3163_v57, %v3166_v59  ;;  %v2792_v57 = vld [vmem:[%s3909_s1 + $0x1b0] sm:$0xff]   ;;  %v2795_v59 = vld [vmem:[%s3909_s1 + $0x1e8] sm:$0xff]  }
  0x57   : > { %v1406_v41 = vsel %vm3351_vm5, %v1404_v43, %v1405_v0 }
  0x58   : > { %1186 = vmatmul.mubr.bf16.vlgmr.msra.gmra.mxu1 %v2129_v14  ;;  %v2252_v14 = vrot.slane %v3222_v60, 9  ;;  %v1411_v60 = vrot.slane %v1409_v15, 4  ;;  %v3492_v52 = vcombine.low %v1403_v42, %v1406_v41 }
  0x59   : > { %1193 = vmatprep.mubr.bf16.mxu1 %v3400_v18  ;;  %2662 = vmatpush3.bf16.msra.mxu1 %v2790_v62 }
  0x5a   : > { %888 = vmatmul.mubr.bf16.gmra.mxu0 %v3244_v11  ;;  %v1381_v11 = vrot.slane %v3117_v4, 5  ;;  %2663 = vmatprep.subr.bf16.mxu1 %v2793_v47  ;;  %v1392_v4 = vsel %vm3351_vm5, %v1390_v23, %v1391_v48  ;;  %v1410_v50 = vsel %vm3351_vm5, %v2252_v14, %v1409_v15  ;;  %v2802_v23 = vld [vmem:[%s3909_s1 + $0x1d8] sm:$0xff]  }
  0x5b   : > { %895 = vmatprep.mubr.bf16.mxu0 %v3313_v29  ;;  %v3454_v7 = vcombine.low %v1389_v6, %v1392_v4  ;;  %v2799_v6 = vld [vmem:[%s3909_s1 + $0x1a0] sm:$0xff]   ;;  %v2805_v4 = vld [vmem:[%s3909_s1 + $0x1d0] sm:$0xff]  }
  0x5c   : > { %v1382_v16 = vsel %vm3351_vm5, %v2248_v28, %v1381_v11  ;;  %v1383_v31 = vrot.slane %v1381_v11, 4  ;;  %v1418_v28 = vsel %vm3351_vm5, %v2253_v20, %v1417_v9  ;;  %v1427_v11 = vrot.slane %v1425_v35, 4 }
  0x5d   : > { %2664 = vmatpush3.bf16.msra.mxu1 %v2793_v47  ;;  %v1420_v47 = vrot.slane %v3289_v21, 5  ;;  %v1413_v21 = vsel %vm3351_vm5, %v1411_v60, %v1412_v49 }
  0x5e   : > { %v1385_v53 = vsel %vm3351_vm5, %v1383_v31, %v1384_v34  ;;  %2665 = vmatprep.subr.bf16.mxu1 %v2797_v38  ;;  %v2812_v34 = vld [vmem:[%s3909_s1 + $0x208] sm:$0xff]   ;;  %v3501_v36 = vcombine.low %v1410_v50, %v1413_v21 }
  0x5f   : > { %v3442_v62 = vcombine.low %v1382_v16, %v1385_v53  ;;  %v2791_v53 = vld [vmem:[%s3909_s1 + $0x1f0] sm:$0xff]  }
  0x60   : > { %1194 = vmatmul.mubr.bf16.gmra.mxu1 %v3365_v46  ;;  %v1397_v46 = vrot.slane %v1395_v45, 4 }
  0x61   : > { %1201 = vmatprep.mubr.bf16.mxu1 %v3434_v51  ;;  %2666 = vmatpush3.bf16.msra.mxu1 %v2797_v38 }
  0x62   : > { %896 = vmatmul.mubr.bf16.gmra.mxu0 %v3279_v61  ;;  %2667 = vmatprep.subr.bf16.mxu1 %v2800_v54  ;;  %v2804_v61 = vld [vmem:[%s3909_s1 + $0x218] sm:$0xff]   ;;  %v1399_v25 = vsel %vm3351_vm5, %v1397_v46, %v1398_v24  ;;  %v2806_v24 = vld [vmem:[%s3909_s1 + $0x190] sm:$0xff]  }
  0x63   : > { %903 = vmatprep.mubr.bf16.mxu0 %v3344_v33  ;;  %v1396_v33 = vsel %vm3351_vm5, %v2250_v63, %v1395_v45  ;;  %v2803_v63 = vld [vmem:[%s3909_s1 + $0x198] sm:$0xff]   ;;  %v2137_v45 = vcombine.low %v3277_v56, %v3286_v5  ;;  %v2811_v56 = vld [vmem:[%s3909_s1 + $0x188] sm:$0xff]   ;;  %v2813_v5 = vld [vmem:[%s3909_s1 + $0x1c0] sm:$0xff]  }
  0x64   : > { %v3468_v1 = vcombine.low %v1396_v33, %v1399_v25  ;;  %v2814_v33 = vld [vmem:[%s3909_s1 + $0x180] sm:$0xff]  }
  0x65   : > { %2668 = vmatpush3.bf16.msra.mxu1 %v2800_v54  ;;  %v2796_v54 = vld [vmem:[%s3909_s1 + $0x1a8] sm:$0xff]  }
  0x66   : > { %2669 = vmatprep.subr.bf16.mxu1 %v2804_v61 }
  0x68   : > { %1202 = vmatmul.mubr.bf16.gmra.mxu1 %v3400_v18 }
  0x69   : > { %1209 = vmatprep.mubr.bf16.mxu1 %v2133_v8  ;;  %2670 = vmatpush3.bf16.msra.mxu1 %v2804_v61  ;;  %v2810_v61 = vld [vmem:[%s3909_s1 + $0x1c8] sm:$0xff]  }
  0x6a   : > { %904 = vmatmul.mubr.bf16.gmra.mxu0 %v3313_v29  ;;  %v1428_v29 = vrot.slane %v3306_v17, 5  ;;  %2671 = vmatprep.subr.bf16.mxu1 %v2807_v40  ;;  %v3505_v17 = vsel %vm3351_vm5, %v2254_v2, %v1425_v35 }
  0x6b   : > { %2645 = vmatprep.mubr.bf16.mxu0 %v3400_v18  ;;  %v1419_v18 = vrot.slane %v1417_v9, 4 }
  0x6c   : > { %v3516_v31 = vsel %vm3351_vm5, %v1427_v11, %v1428_v29 }
  0x6d   : > { %v1421_v38 = vsel %vm3351_vm5, %v1419_v18, %v1420_v47  ;;  %2672 = vmatpush3.bf16.msra.mxu1 %v2807_v40  ;;  %v2264_v48 = vcombine.low %v3505_v17, %v3516_v31 }
  0x6e   : > { %v3512_v16 = vcombine.low %v1418_v28, %v1421_v38  ;;  %2673 = vmatprep.subr.bf16.mxu1 %v2812_v34 }
  0x70   : > { %1210 = vmatmul.mubr.bf16.gmra.mxu1 %v3434_v51 }
  0x71   : > { %1217 = vmatprep.mubr.bf16.mxu1 %v2134_v37  ;;  %2674 = vmatpush3.bf16.msra.mxu1 %v2812_v34 }
  0x72   : > { %2646 = vmatmul.mubr.bf16.vlgmr.msra.gmra.mxu0 %v3434_v51  ;;  %2675 = vmatprep.subr.bf16.mxu1 %v2815_v22  ;;  %v2798_v51 = vld [vmem:[%s3909_s1 + $0x1e0] sm:$0xff]  }
  0x73   : > { %2518 = vmatpush3.bf16.msra.mxu0 %v2789_v27  ;;  %2649 = vmatprep.mubr.bf16.mxu0 %v2133_v8 }
  0x74   : > { %2519 = vmatprep.subr.bf16.mxu0 %v2791_v53 }
  0x75   : > { %2676 = vmatpush3.bf16.msra.mxu1 %v2815_v22 }
  0x77   : > { %2520 = vmatpush3.bf16.msra.mxu0 %v2792_v57 }
  0x78   : > { %2521 = vmatprep.subr.bf16.mxu0 %v2795_v59  ;;  %1218 = vmatmul.mubr.bf16.gmra.mxu1 %v2133_v8 }
  0x79   : > { %1225 = vmatprep.mubr.bf16.mxu1 %v3237_v3 }
  0x7a   : > { %2650 = vmatmul.mubr.bf16.gmra.mxu0 %v2134_v37 }
  0x7b   : > { %2522 = vmatpush3.bf16.msra.mxu0 %v2796_v54  ;;  %2653 = vmatprep.mubr.bf16.mxu0 %v3237_v3 }
  0x7c   : > { %2523 = vmatprep.subr.bf16.mxu0 %v2798_v51 }
  0x7f   : > { %2524 = vmatpush3.bf16.msra.mxu0 %v2799_v6 }
  0x80   : > { %2525 = vmatprep.subr.bf16.mxu0 %v2802_v23  ;;  %1226 = vmatmul.mubr.bf16.gmra.mxu1 %v2134_v37 }
  0x81   : > { %1233 = vmatprep.mubr.bf16.mxu1 %v3263_v30 }
  0x82   : > { %2654 = vmatmul.mubr.bf16.gmra.mxu0 %v3263_v30 }
  0x83   : > { %2526 = vmatpush3.bf16.msra.mxu0 %v2803_v63  ;;  %2657 = vmatprep.mubr.bf16.mxu0 %v2137_v45 }
  0x84   : > { %2527 = vmatprep.subr.bf16.mxu0 %v2805_v4 }
  0x87   : > { %2528 = vmatpush3.bf16.msra.mxu0 %v2806_v24 }
  0x88   : > { %2529 = vmatprep.subr.bf16.mxu0 %v2810_v61  ;;  %1234 = vmatmul.mubr.bf16.gmra.mxu1 %v3237_v3 }
  0x89   : > { %1241 = vmatprep.mubr.bf16.mxu1 %v2137_v45 }
  0x8a   : > { %2658 = vmatmul.mubr.bf16.gmra.mxu0 %v2138_v55 }
  0x8b   : > { %2530 = vmatpush3.bf16.msra.mxu0 %v2811_v56  ;;  %1695 = vmatprep.mubr.bf16.mxu0 %v3389_v12 }
  0x8c   : > { %2531 = vmatprep.subr.bf16.mxu0 %v2813_v5 }
  0x8f   : > { %2532 = vmatpush3.bf16.msra.mxu0 %v2814_v33 }
  0x90   : > { %1242 = vmatmul.mubr.bf16.gmra.mxu1 %v3263_v30 }
  0x91   : > { %2677 = vmatprep.mubr.bf16.mxu1 %v3426_v39 }
  0x92   : > { %1696 = vmatmul.mubr.bf16.vlgmr.msra.gmra.mxu0 %v2255_v32 }
  0x93   : > { %1703 = vmatprep.mubr.bf16.mxu0 %v3426_v39 }
  0x98   : > { %2678 = vmatmul.mubr.bf16.vlgmr.msra.gmra.mxu1 %v3442_v62 }
  0x99   : > { %2681 = vmatprep.mubr.bf16.mxu1 %v3454_v7 }
  0x9a   : > { %1704 = vmatmul.mubr.bf16.gmra.mxu0 %v3389_v12 }
  0x9b   : > { %1711 = vmatprep.mubr.bf16.mxu0 %v3442_v62 }
  0xa0   : > { %2682 = vmatmul.mubr.bf16.gmra.mxu1 %v3468_v1 }
  0xa1   : > { %2685 = vmatprep.mubr.bf16.mxu1 %v3492_v52 }
  0xa2   : > { %1712 = vmatmul.mubr.bf16.gmra.mxu0 %v3426_v39 }
  0xa3   : > { %1719 = vmatprep.mubr.bf16.mxu0 %v3454_v7 }
  0xa8   : > { %2686 = vmatmul.mubr.bf16.gmra.mxu1 %v3501_v36 }
  0xa9   : > { %2689 = vmatprep.mubr.bf16.mxu1 %v3512_v16 }
  0xaa   : > { %1720 = vmatmul.mubr.bf16.gmra.mxu0 %v3442_v62 }
  0xab   : > { %1727 = vmatprep.mubr.bf16.mxu0 %v3468_v1 }
  0xb0   : > { %2690 = vmatmul.mubr.bf16.gmra.mxu1 %v2264_v48 }
  0xb2   : > { %1728 = vmatmul.mubr.bf16.gmra.mxu0 %v3454_v7 }
  0xb3   : > { %1735 = vmatprep.mubr.bf16.mxu0 %v3492_v52 }
  0xba   : > { %1736 = vmatmul.mubr.bf16.gmra.mxu0 %v3468_v1 }
  0xbb   : > { %1743 = vmatprep.mubr.bf16.mxu0 %v3501_v36 }
  0xc2   : > { %1744 = vmatmul.mubr.bf16.gmra.mxu0 %v3492_v52 }
  0xc3   : > { %1751 = vmatprep.mubr.bf16.mxu0 %v3512_v16 }
  0xca   : > { %1752 = vmatmul.mubr.bf16.gmra.mxu0 %v3501_v36 }
  0xf2   : > { %v2373_v3 = vpop.f32.mrf.mxu0 }
  0xf4   : > { %v2374_v30 = vpop.f32.mrf.mxu0 }
  0xf5   : > { %v2375_v13 = vadd.f32 %v2374_v30, %v2373_v3 }
  0xf6   : > { %v2376_v19 = vpop.f32.mrf.mxu0  ;;  %v2615_v55 = vpop.f32.mrf.mxu1 }
  0xf8   : > { %v2377_v12 = vpop.f32.mrf.mxu0  ;;  %v946_v58 = vpop.f32.mrf.mxu1 }
  0xf9   : > { %v2378_v26 = vadd.f32 %v2377_v12, %v2376_v19  ;;  %v3608_v32 = vadd.f32 %v2375_v13, %v946_v58 }
  0xfa   : > { %v2379_v39 = vpop.f32.mrf.mxu0  ;;  %v2616_v62 = vpop.f32.mrf.mxu1 }
  0xfc   : > { %v2380_v7 = vpop.f32.mrf.mxu0  ;;  %v949_v46 = vpop.f32.mrf.mxu1 }
  0xfd   : > { %v2381_v44 = vadd.f32 %v2380_v7, %v2379_v39  ;;  %v3610_v8 = vadd.f32 %v2378_v26, %v949_v46 }
  0xfe   : > { %v2382_v25 = vpop.f32.mrf.mxu0  ;;  %v2619_v10 = vpop.f32.mrf.mxu1 }
  0xff   : > { %v3612_v1 = vadd.f32 %v2615_v55, %v2381_v44 }
 0x100   : > { %v2383_v0 = vpop.f32.mrf.mxu0  ;;  %v962_v14 = vpop.f32.mrf.mxu1 }
 0x101   : > { %v2384_v15 = vadd.f32 %v2383_v0, %v2382_v25 }
 0x102   : > { %v2385_v40 = vpop.f32.mrf.mxu0  ;;  %v2620_v42 = vpop.f32.mrf.mxu1 }
 0x103   : > { %v3614_v43 = vadd.f32 %v2616_v62, %v2384_v15 }
 0x104   : > { %v2386_v49 = vpop.f32.mrf.mxu0  ;;  %v965_v20 = vpop.f32.mrf.mxu1 }
 0x105   : > { %v2387_v50 = vadd.f32 %v2386_v49, %v2385_v40 }
 0x106   : > { %v2388_v60 = vpop.f32.mrf.mxu0  ;;  %v2623_v41 = vpop.f32.mrf.mxu1 }
 0x107   : > { %v3616_v9 = vadd.f32 %v2387_v50, %v962_v14 }
 0x108   : > { %v2389_v47 = vpop.f32.mrf.mxu0  ;;  %v978_v29 = vpop.f32.mrf.mxu1 }
 0x109   : > { %v2390_v2 = vadd.f32 %v2389_v47, %v2388_v60 }
 0x10a   : > { %v2391_v35 = vpop.f32.mrf.mxu0  ;;  %v2624_v28 = vpop.f32.mrf.mxu1 }
 0x10b   : > { %v3618_v52 = vadd.f32 %v2390_v2, %v965_v20 }
 0x10c   : > { %v2392_v21 = vpop.f32.mrf.mxu0  ;;  %v981_v36 = vpop.f32.mrf.mxu1 }
 0x10d   : > { %v2393_v18 = vadd.f32 %v2392_v21, %v2391_v35 }
 0x10e   : > { %v2394_v34 = vpop.f32.mrf.mxu0 }
 0x10f   : > { %v3620_v17 = vadd.f32 %v2619_v10, %v2393_v18 }
 0x110   : > { %v2395_v11 = vpop.f32.mrf.mxu0  ;;  %v2627_v16 = vpop.f32.mrf.mxu1 }
 0x111   : > { %v2396_v38 = vadd.f32 %v2395_v11, %v2394_v34 }
 0x112   : > { %v2397_v27 = vpop.f32.mrf.mxu0  ;;  %v994_v53 = vpop.f32.mrf.mxu1 }
 0x113   : > { %v3622_v31 = vadd.f32 %v2620_v42, %v2396_v38 }
 0x114   : > { %v2398_v37 = vpop.f32.mrf.mxu0  ;;  %v2628_v57 = vpop.f32.mrf.mxu1 }
 0x115   : > { %v2399_v48 = vadd.f32 %v2398_v37, %v2397_v27 }
 0x116   : > { %v2400_v22 = vpop.f32.mrf.mxu0  ;;  %v997_v51 = vpop.f32.mrf.mxu1 }
 0x117   : > { %v3624_v59 = vadd.f32 %v2399_v48, %v978_v29 }
 0x118   : > { %v2401_v54 = vpop.f32.mrf.mxu0  ;;  %v3626_v63 = vpop.f32.mrf.mxu1 }
 0x119   : > { %v2402_v6 = vadd.f32 %v2401_v54, %v2400_v22 }
 0x11a   : > { %v2403_v23 = vpop.f32.mrf.mxu0  ;;  %v3630_v24 = vpop.f32.mrf.mxu1 }
 0x11b   : > { %v3628_v4 = vadd.f32 %v2402_v6, %v981_v36 }
 0x11c   : > { %v2404_v45 = vpop.f32.mrf.mxu0  ;;  %v3632_v5 = vpop.f32.mrf.mxu1 }
 0x11d   : > { %v2405_v61 = vadd.f32 %v2404_v45, %v2403_v23 }
 0x11e   : > { %v2406_v56 = vpop.f32.mrf.mxu0  ;;  %v3636_v30 = vpop.f32.mrf.mxu1 }
 0x11f   : > { %v3634_v33 = vadd.f32 %v2623_v41, %v2405_v61 }
 0x120   : > { %v2407_v3 = vpop.f32.mrf.mxu0  ;;  %v3638_v55 = vpop.f32.mrf.mxu1 }
 0x121   : > { %3916 = vst [vmem:[#allocation2_spill] sm:$0xff] %v3634_v33  ;;  %v2408_v13 = vadd.f32 %v2407_v3, %v2406_v56 }
 0x122   : > { %v2409_v19 = vpop.f32.mrf.mxu0  ;;  %v3642_v26 = vpop.f32.mrf.mxu1 }
 0x123   : > { %v3640_v12 = vadd.f32 %v2624_v28, %v2408_v13 }
 0x124   : > { %v2410_v58 = vpop.f32.mrf.mxu0  ;;  %v3644_v7 = vpop.f32.mrf.mxu1 }
 0x125   : > { %3917 = vst [vmem:[#allocation3_spill] sm:$0xff] %v3640_v12  ;;  %v2411_v39 = vadd.f32 %v2410_v58, %v2409_v19  ;;  %v2455_v12 = vadd.f32 %v3630_v24, %v3626_v63 }
 0x126   : > { %v2412_v62 = vpop.f32.mrf.mxu0  ;;  %v3648_v25 = vpop.f32.mrf.mxu1 }
 0x127   : > { %v3646_v46 = vadd.f32 %v2411_v39, %v994_v53  ;;  %v2464_v63 = vadd.f32 %v3648_v25, %v3644_v7 }
 0x128   : > { %v2413_v44 = vpop.f32.mrf.mxu0  ;;  %v3650_v14 = vpop.f32.mrf.mxu1 }
 0x129   : > { %3918 = vst [vmem:[#allocation4_spill] sm:$0xff] %v3646_v46  ;;  %v2414_v10 = vadd.f32 %v2413_v44, %v2412_v62  ;;  %v1199_v25 = vadd.f32 %v2464_v63, %v3614_v43 }
 0x12a   : > { %v2415_v0 = vpop.f32.mrf.mxu0  ;;  %v3654_v42 = vpop.f32.mrf.mxu1 }
 0x12b   : > { %v3652_v15 = vadd.f32 %v2414_v10, %v997_v51 }
 0x12c   : > { %v2416_v40 = vpop.f32.mrf.mxu0  ;;  %v3656_v50 = vpop.f32.mrf.mxu1 }
 0x12d   : > { %3919 = vst [vmem:[#allocation5_spill] sm:$0xff] %v3652_v15  ;;  %v2417_v49 = vadd.f32 %v2416_v40, %v2415_v0 }
 0x12e   : > { %v2418_v20 = vpop.f32.mrf.mxu0  ;;  %v3658_v41 = vpop.f32.mrf.mxu1 }
 0x12f   : > { %v1003_v60 = vadd.f32 %v2627_v16, %v2417_v49 }
 0x130   : > { %v2419_v47 = vpop.f32.mrf.mxu0  ;;  %v3662_v29 = vpop.f32.mrf.mxu1 }
 0x131   : > { %v2420_v2 = vadd.f32 %v2419_v47, %v2418_v20 }
 0x132   : > { %v3660_v35 = vpop.f32.mrf.mxu0  ;;  %v3664_v18 = vpop.f32.mrf.mxu1 }
 0x133   : > { %v1006_v21 = vadd.f32 %v2628_v57, %v2420_v2 }
 0x134   : > { %v1284_v28 = vpop.f32.mrf.mxu0  ;;  %v3668_v36 = vpop.f32.mrf.mxu1 }
 0x136   : > { %v3666_v34 = vpop.f32.mrf.mxu0  ;;  %v3672_v38 = vpop.f32.mrf.mxu1 }
 0x138   : > { %v3670_v11 = vpop.f32.mrf.mxu0  ;;  %v3676_v16 = vpop.f32.mrf.mxu1 }
 0x13a   : > { %v3674_v27 = vpop.f32.mrf.mxu0  ;;  %v3680_v53 = vpop.f32.mrf.mxu1 }
 0x13c   : > { %v3678_v37 = vpop.f32.mrf.mxu0  ;;  %v3684_v22 = vpop.f32.mrf.mxu1 }
 0x13e   : > { %v3682_v48 = vpop.f32.mrf.mxu0  ;;  %v3688_v54 = vpop.f32.mrf.mxu1 }
 0x140   : > { %v3686_v57 = vpop.f32.mrf.mxu0  ;;  %v3692_v6 = vpop.f32.mrf.mxu1 }
 0x142   : > { %v3690_v51 = vpop.f32.mrf.mxu0  ;;  %v3696_v45 = vpop.f32.mrf.mxu1 }
 0x143   : > { %3920 = vst [vmem:[#allocation6_spill] sm:$0xff] %v3690_v51 }
 0x144   : > { %v3694_v23 = vpop.f32.mrf.mxu0  ;;  %v3700_v56 = vpop.f32.mrf.mxu1 }
 0x145   : > { %3922 = vst [vmem:[#allocation8_spill] sm:$0xff] %v3700_v56 }
 0x146   : > { %v3698_v61 = vpop.f32.mrf.mxu0  ;;  %v3704_v13 = vpop.f32.mrf.mxu1 }
 0x147   : > { %3921 = vst [vmem:[#allocation7_spill] sm:$0xff] %v3698_v61  ;;  %3924 = vst [vmem:[#allocation10_spill] sm:$0xff] %v3704_v13 }
 0x148   : > { %v3702_v3 = vpop.f32.mrf.mxu0  ;;  %v3706_v58 = vpop.f32.mrf.mxu1 }
 0x149   : > { %3923 = vst [vmem:[#allocation9_spill] sm:$0xff] %v3702_v3  ;;  %3925 = vst [vmem:[#allocation11_spill] sm:$0xff] %v3706_v58 }
 0x14a   : > { %v2659_v19 = vpop.f32.mrf.mxu0  ;;  %v3710_v62 = vpop.f32.mrf.mxu1 }
 0x14b   : > { %3927 = vst [vmem:[#allocation13_spill] sm:$0xff] %v3710_v62  ;;  %v2461_v62 = vadd.f32 %v3642_v26, %v3638_v55 }
 0x14c   : > { %v3708_v39 = vpop.f32.mrf.mxu0  ;;  %v3712_v10 = vpop.f32.mrf.mxu1 }
 0x14d   : > { %3926 = vst [vmem:[#allocation12_spill] sm:$0xff] %v3708_v39  ;;  %3928 = vst [vmem:[#allocation14_spill] sm:$0xff] %v3712_v10  ;;  %v1196_v24 = vadd.f32 %v2461_v62, %v3612_v1  ;;  %v2467_v1 = vadd.f32 %v3654_v42, %v3650_v14 }
 0x14e   : > { %v2660_v44 = vpop.f32.mrf.mxu0  ;;  %v3716_v40 = vpop.f32.mrf.mxu1 }
 0x14f   : > { %3930 = vst [vmem:[#allocation16_spill] sm:$0xff] %v3716_v40  ;;  %v1204_v62 = vadd.f32 %v2467_v1, %v3616_v9 }
 0x150   : > { %v3714_v0 = vpop.f32.mrf.mxu0  ;;  %v2495_v20 = vpop.f32.mrf.mxu1 }
 0x151   : > { %3929 = vst [vmem:[#allocation15_spill] sm:$0xff] %v3714_v0  ;;  %v1301_v63 = vadd.f32 %v3678_v37, %v1204_v62 }
 0x152   : > { %v2533_v49 = vpop.f32.mrf.mxu0  ;;  %v2496_v2 = vpop.f32.mrf.mxu1 }
 0x153   : > { %v2497_v15 = vadd.f32 %v2496_v2, %v2495_v20  ;;  %v2458_v20 = vadd.f32 %v3636_v30, %v3632_v5  ;;  %v1188_v2 = vadd.f32 %v2455_v12, %v3608_v32  ;;  %v3736_v32 = vld [vmem:[%s3910_s2] ss:$0 sm:$0xff] }
 0x154   : > { %v2534_v47 = vpop.f32.mrf.mxu0  ;;  %v2498_v61 = vpop.f32.mrf.mxu1 }
 0x155   : > { %v1244_v39 = vadd.f32 %v2497_v15, %v1003_v60  ;;  %v2535_v40 = vadd.f32 %v2534_v47, %v2533_v49  ;;  %v1285_v15 = vadd.f32 %v1284_v28, %v1188_v2 }
 0x156   : > { %v2536_v46 = vpop.f32.mrf.mxu0  ;;  %v2499_v10 = vpop.f32.mrf.mxu1 }
 0x157   : > { %v3722_v51 = vadd.f32 %v2659_v19, %v1244_v39  ;;  %v2500_v0 = vadd.f32 %v2499_v10, %v2498_v61  ;;  %v1293_v10 = vadd.f32 %v3660_v35, %v1196_v24 }
 0x158   : > { %v2537_v58 = vpop.f32.mrf.mxu0  ;;  %v2679_v13 = vpop.f32.mrf.mxu1 }
 0x159   : > { %v1247_v56 = vadd.f32 %v2500_v0, %v1006_v21  ;;  %v2538_v19 = vadd.f32 %v2537_v58, %v2536_v46 }
 0x15a   : > { %v2539_v33 = vpop.f32.mrf.mxu0  ;;  %v1794_v55 = vpop.f32.mrf.mxu1 }
 0x15b   : > { %v3730_v60 = vadd.f32 %v2660_v44, %v1247_v56  ;;  %v1795_v61 = vadd.f32 %v2535_v40, %v1794_v55 }
 0x15c   : > { %v2540_v3 = vpop.f32.mrf.mxu0  ;;  %v2680_v5 = vpop.f32.mrf.mxu1 }
 0x15d   : > { %v2541_v26 = vadd.f32 %v2540_v3, %v2539_v33  ;;  %v1191_v33 = vadd.f32 %v2458_v20, %v3610_v8  ;;  %v1857_v12 = vadd.f32 %v1795_v61, %v1285_v15 }
 0x15e   : > { %v2542_v39 = vpop.f32.mrf.mxu0  ;;  %v1797_v46 = vpop.f32.mrf.mxu1 }
 0x15f   : > { %v1803_v30 = vadd.f32 %v2679_v13, %v2541_v26  ;;  %v1288_v35 = vadd.f32 %v3670_v11, %v1191_v33  ;;  %v3744_v56 = vadd.f32 %v3736_v32, %v1857_v12  ;;  %v1798_v3 = vadd.f32 %v2538_v19, %v1797_v46 }
 0x160   : > { %v2543_v7 = vpop.f32.mrf.mxu0  ;;  %v1296_v13 = vadd.f32 %v3666_v34, %v1199_v25  ;;  %v2683_v42 = vpop.f32.mrf.mxu1  ;;  %v2470_v11 = vadd.f32 %v3658_v41, %v3656_v50  ;;  %v2473_v50 = vadd.f32 %v3664_v18, %v3662_v29 }
 0x161   : > { %v1859_v21 = vadd.f32 %v1803_v30, %v1293_v10  ;;  %v2544_v28 = vadd.f32 %v2543_v7, %v2542_v39  ;;  %v2338_v43 = vmul.f32 -1.442695, %v3744_v56  ;;  %v1858_v44 = vadd.f32 %v1798_v3, %v1288_v35 }
 0x162   : > { %v2545_v58 = vpop.f32.mrf.mxu0  ;;  %v1810_v20 = vpop.f32.mrf.mxu1  ;;  %v1207_v15 = vadd.f32 %v2470_v11, %v3618_v52  ;;  %v1212_v18 = vadd.f32 %v2473_v50, %v3620_v17  ;;  %v2476_v52 = vadd.f32 %v3672_v38, %v3668_v36  ;;  %v2479_v17 = vadd.f32 %v3680_v53, %v3676_v16 }
 0x163   : > { %v3748_v14 = vadd.f32 %v3736_v32, %v1859_v21  ;;  %v1806_v8 = vadd.f32 %v2680_v5, %v2544_v28  ;;  %2816 = vpow2.f32 %v2338_v43  ;;  %v3756_v34 = vadd.f32 %v3736_v32, %v1858_v44 }
 0x164   : > { %v2546_v0 = vpop.f32.mrf.mxu0  ;;  %v2684_v55 = vpop.f32.mrf.mxu1  ;;  %v1304_v5 = vadd.f32 %v3686_v57, %v1207_v15  ;;  %v1309_v57 = vadd.f32 %v3674_v27, %v1212_v18  ;;  %v1215_v36 = vadd.f32 %v2476_v52, %v3622_v31  ;;  %v2482_v31 = vadd.f32 %v3688_v54, %v3684_v22 }
 0x165   : > { %v2340_v40 = vmul.f32 -1.442695, %v3748_v14  ;;  %v1860_v49 = vadd.f32 %v1806_v8, %v1296_v13  ;;  %v2547_v47 = vadd.f32 %v2546_v0, %v2545_v58  ;;  %v2339_v41 = vmul.f32 -1.442695, %v3756_v34 }
 0x166   : > { %v2548_v2 = vpop.f32.mrf.mxu0  ;;  %v1813_v10 = vpop.f32.mrf.mxu1  ;;  %v1220_v43 = vadd.f32 %v2479_v17, %v3624_v59 }
 0x167   : > { %2818 = vpow2.f32 %v2340_v40  ;;  %v3760_v9 = vadd.f32 %v3736_v32, %v1860_v49  ;;  %v1811_v24 = vadd.f32 %v2547_v47, %v1810_v20 }
 0x168   : > { %v2549_v26 = vpop.f32.mrf.mxu0  ;;  %2820 = vpow2.f32 %v2339_v41  ;;  %v3772_v33 = vpop.f32.mrf.mxu1  ;;  %v1317_v22 = vadd.f32 %v3694_v23, %v1220_v43 }
 0x169   : > { %v2341_v61 = vmul.f32 -1.442695, %v3760_v9  ;;  %v1861_v19 = vadd.f32 %v1811_v24, %v1301_v63  ;;  %v2550_v39 = vadd.f32 %v2549_v26, %v2548_v2  ;;  %v2485_v24 = vadd.f32 %v3696_v45, %v3692_v6 }
 0x16a   : > { %v2551_v37 = vpop.f32.mrf.mxu0  ;;  %v1826_v3 = vpop.f32.mrf.mxu1 }
 0x16b   : > { %2822 = vpow2.f32 %v2341_v61  ;;  %v3769_v30 = vadd.f32 %v3736_v32, %v1861_v19  ;;  %v1814_v29 = vadd.f32 %v2550_v39, %v1813_v10  ;;  %v3932_v10 = vld [vmem:[#allocation9_spill] sm:$0xff] }
 0x16c   : > { %v2552_v1 = vpop.f32.mrf.mxu0  ;;  %v3797_v11 = vpop.f32.mrf.mxu1 }
 0x16d   : > { %v2342_v12 = vmul.f32 -1.442695, %v3769_v30  ;;  %v1862_v7 = vadd.f32 %v1814_v29, %v1304_v5  ;;  %v2553_v25 = vadd.f32 %v2552_v1, %v2551_v37  ;;  %v3933_v5 = vld [vmem:[#allocation8_spill] sm:$0xff]  ;;  %v3934_v29 = vld [vmem:[#allocation10_spill] sm:$0xff] }
 0x16e   : > { %v2554_v46 = vpop.f32.mrf.mxu0  ;;  %v1829_v26 = vpop.f32.mrf.mxu1  ;;  %v2488_v18 = vadd.f32 %v3934_v29, %v3933_v5  ;;  %v3935_v1 = vld [vmem:[#allocation2_spill] sm:$0xff] }
 0x16f   : > { %2824 = vpow2.f32 %v2342_v12  ;;  %v3780_v21 = vadd.f32 %v3736_v32, %v1862_v7  ;;  %v1819_v28 = vadd.f32 %v2683_v42, %v2553_v25  ;;  %v1312_v42 = vadd.f32 %v3682_v48, %v1215_v36 }
 0x170   : > { %v2555_v35 = vpop.f32.mrf.mxu0  ;;  %v2817_v8 = vpop.eup %2816  ;;  %v1228_v52 = vadd.f32 %v2485_v24, %v3935_v1 }
 0x171   : > { %v2343_v38 = vmul.f32 -1.442695, %v3780_v21  ;;  %v1863_v58 = vadd.f32 %v1819_v28, %v1309_v57  ;;  %v2556_v13 = vadd.f32 %v2555_v35, %v2554_v46  ;;  %v1944_v44 = vadd.f32 1.0, %v2817_v8  ;;  %v3821_v7 = vpop.f32.mrf.mxu1  ;;  %v3936_v35 = vld [vmem:[#allocation6_spill] sm:$0xff] }
 0x172   : > { %v2557_v27 = vpop.f32.mrf.mxu0 }
 0x173   : > { %2826 = vpow2.f32 %v2343_v38  ;;  %v3792_v16 = vadd.f32 %v3736_v32, %v1863_v58  ;;  %v1822_v53 = vadd.f32 %v2684_v55, %v2556_v13  ;;  %v1223_v55 = vadd.f32 %v2482_v31, %v3628_v4  ;;  %v3937_v13 = vld [vmem:[#allocation11_spill] sm:$0xff]  ;;  %v1842_v31 = vpop.f32.mrf.mxu1 }
 0x174   : > { %v2819_v62 = vpop.eup %2818  ;;  %v2558_v0 = vpop.f32.mrf.mxu0  ;;  %2828 = vrcp.f32 %v1944_v44 }
 0x175   : > { %v1946_v40 = vadd.f32 1.0, %v2819_v62  ;;  %v2344_v49 = vmul.f32 -1.442695, %v3792_v16  ;;  %v1864_v47 = vadd.f32 %v1822_v53, %v1312_v42  ;;  %v2559_v48 = vadd.f32 %v2558_v0, %v2557_v27  ;;  %v2821_v2 = vpop.eup %2820  ;;  %v3938_v27 = vld [vmem:[#allocation13_spill] sm:$0xff]  ;;  %v3939_v42 = vld [vmem:[#allocation3_spill] sm:$0xff] }
 0x176   : > { %v2560_v20 = vpop.f32.mrf.mxu0  ;;  %v1945_v50 = vadd.f32 1.0, %v2821_v2  ;;  %v1320_v37 = vadd.f32 %v3932_v10, %v1223_v55  ;;  %v2491_v8 = vadd.f32 %v3938_v27, %v3937_v13  ;;  %v1231_v53 = vadd.f32 %v2488_v18, %v3939_v42  ;;  %v3943_v55 = vld [vmem:[#allocation4_spill] sm:$0xff] }
 0x177   : > { %2830 = vrcp.f32 %v1946_v40  ;;  %v3806_v59 = vadd.f32 %v3736_v32, %v1864_v47  ;;  %v1827_v54 = vadd.f32 %v2559_v48, %v1826_v3  ;;  %v1325_v3 = vadd.f32 %v3936_v35, %v1228_v52  ;;  %v3940_v48 = vld [vmem:[#allocation7_spill] sm:$0xff] }
 0x178   : > { %v2823_v63 = vpop.eup %2822  ;;  %2832 = vpow2.f32 %v2344_v49  ;;  %v2561_v41 = vpop.f32.mrf.mxu0 }
 0x179   : > { %v1947_v15 = vadd.f32 1.0, %v2823_v63  ;;  %v2345_v61 = vmul.f32 -1.442695, %v3806_v59  ;;  %v1865_v23 = vadd.f32 %v1827_v54, %v1317_v22  ;;  %v2562_v19 = vadd.f32 %v2561_v41, %v2560_v20  ;;  %v3941_v54 = vld [vmem:[#allocation14_spill] sm:$0xff]  ;;  %v3942_v63 = vld [vmem:[#allocation16_spill] sm:$0xff] }
 0x17a   : > { %2834 = vrcp.f32 %v1945_v50  ;;  %v2563_v39 = vpop.f32.mrf.mxu0  ;;  %v1328_v20 = vadd.f32 %v3940_v48, %v1231_v53  ;;  %v2494_v24 = vadd.f32 %v3942_v63, %v3941_v54  ;;  %v1236_v50 = vadd.f32 %v2491_v8, %v3943_v55 }
 0x17b   : > { %2836 = vrcp.f32 %v1947_v15  ;;  %v3816_v6 = vadd.f32 %v3736_v32, %v1865_v23  ;;  %v1830_v4 = vadd.f32 %v2562_v19, %v1829_v26  ;;  %v2692_v15 = vpop.f32.mrf.mxu1 }
 0x17c   : > { %v2825_v45 = vpop.eup %2824  ;;  %2838 = vpow2.f32 %v2345_v61  ;;  %v2564_v12 = vpop.f32.mrf.mxu0 }
 0x17d   : > { %v1948_v25 = vadd.f32 1.0, %v2825_v45  ;;  %v2346_v46 = vmul.f32 -1.442695, %v3816_v6  ;;  %v1866_v57 = vadd.f32 %v1830_v4, %v1320_v37  ;;  %v2565_v28 = vadd.f32 %v2564_v12, %v2563_v39  ;;  %v3944_v45 = vld [vmem:[#allocation12_spill] sm:$0xff] }
 0x17e   : > { %v2566_v17 = vpop.f32.mrf.mxu0  ;;  %v1333_v5 = vadd.f32 %v3944_v45, %v1236_v50 }
 0x17f   : > { %2840 = vrcp.f32 %v1948_v25  ;;  %v3826_v36 = vadd.f32 %v3736_v32, %v1866_v57  ;;  %v1835_v38 = vadd.f32 %v3772_v33, %v2565_v28  ;;  %v1845_v25 = vpop.f32.mrf.mxu1 }
 0x180   : > { %v2827_v58 = vpop.eup %2826  ;;  %2842 = vpow2.f32 %v2346_v46  ;;  %v2567_v62 = vpop.f32.mrf.mxu0 }
 0x181   : > { %v1949_v43 = vadd.f32 1.0, %v2827_v58  ;;  %v2347_v44 = vmul.f32 -1.442695, %v3826_v36  ;;  %v1867_v0 = vadd.f32 %v1835_v38, %v1325_v3  ;;  %v2568_v40 = vadd.f32 %v2567_v62, %v2566_v17  ;;  %v2829_v47 = vpop.eup %2828  ;;  %v3946_v58 = vld [vmem:[#allocation15_spill] sm:$0xff] }
 0x182   : > { %v2569_v49 = vpop.f32.mrf.mxu0  ;;  %v1992_v41 = vmul.f32 %v2829_v47, %v3744_v56 }
 0x183   : > { %2844 = vrcp.f32 %v1949_v43  ;;  %v3840_v33 = vadd.f32 %v3736_v32, %v1867_v0  ;;  %v1838_v2 = vadd.f32 %v3797_v11, %v2568_v40 }
 0x184   : > { %v2831_v22 = vpop.eup %2830  ;;  %2846 = vpow2.f32 %v2347_v44  ;;  %v2570_v26 = vpop.f32.mrf.mxu0  ;;  %2008 = vst [vmem:[%s3837_s11] sm:$0xff] %v1992_v41 }
 0x185   : > { %v2833_v61 = vpop.eup %2832  ;;  %v1994_v23 = vmul.f32 %v2831_v22, %v3748_v14  ;;  %v2348_v19 = vmul.f32 -1.442695, %v3840_v33  ;;  %v1868_v39 = vadd.f32 %v1838_v2, %v1328_v20  ;;  %v2571_v10 = vadd.f32 %v2570_v26, %v2569_v49  ;;  %v3945_v14 = vld [vmem:[#allocation5_spill] sm:$0xff] }
 0x186   : > { %v1950_v11 = vadd.f32 1.0, %v2833_v61  ;;  %v2572_v37 = vpop.f32.mrf.mxu0  ;;  %v1239_v1 = vadd.f32 %v2494_v24, %v3945_v14 }
 0x187   : > { %v2835_v4 = vpop.eup %2834  ;;  %2010 = vst [vmem:[%s3837_s11 + $0x10] sm:$0xff] %v1994_v23  ;;  %2848 = vpow2.f32 %v2348_v19  ;;  %v3853_v56 = vadd.f32 %v3736_v32, %v1868_v39  ;;  %v1843_v29 = vadd.f32 %v2571_v10, %v1842_v31 }
 0x188   : > { %v2837_v18 = vpop.eup %2836  ;;  %v1993_v52 = vmul.f32 %v2835_v4, %v3756_v34  ;;  %2850 = vrcp.f32 %v1950_v11  ;;  %v2573_v12 = vpop.f32.mrf.mxu0  ;;  %v1336_v13 = vadd.f32 %v3946_v58, %v1239_v1 }
 0x189   : > { %v2839_v46 = vpop.eup %2838  ;;  %v1995_v57 = vmul.f32 %v2837_v18, %v3760_v9  ;;  %v2349_v28 = vmul.f32 -1.442695, %v3853_v56  ;;  %v1869_v17 = vadd.f32 %v1843_v29, %v1333_v5  ;;  %v2574_v35 = vadd.f32 %v2573_v12, %v2572_v37 }
 0x18a   : > { %2009 = vst [vmem:[%s3837_s11 + $0x8] sm:$0xff] %v1993_v52  ;;  %v1951_v3 = vadd.f32 1.0, %v2839_v46  ;;  %v2575_v38 = vpop.f32.mrf.mxu0 }
 0x18b   : > { %2011 = vst [vmem:[%s3837_s11 + $0x18] sm:$0xff] %v1995_v57  ;;  %2852 = vpow2.f32 %v2349_v28  ;;  %v3863_v34 = vadd.f32 %v3736_v32, %v1869_v17  ;;  %v1846_v27 = vadd.f32 %v2574_v35, %v1845_v25 }
 0x18c   : > { %v2841_v8 = vpop.eup %2840  ;;  %2854 = vrcp.f32 %v1951_v3  ;;  %v2576_v42 = vpop.f32.mrf.mxu0 }
 0x18d   : > { %v2843_v9 = vpop.eup %2842  ;;  %v1996_v53 = vmul.f32 %v2841_v8, %v3769_v30  ;;  %v2350_v62 = vmul.f32 -1.442695, %v3863_v34  ;;  %v1870_v31 = vadd.f32 %v1846_v27, %v1336_v13  ;;  %v2577_v43 = vadd.f32 %v2576_v42, %v2575_v38 }
 0x18e   : > { %v1952_v44 = vadd.f32 1.0, %v2843_v9  ;;  %v2578_v0 = vpop.f32.mrf.mxu0 }
 0x18f   : > { %2012 = vst [vmem:[%s3837_s11 + $0x20] sm:$0xff] %v1996_v53  ;;  %2856 = vpow2.f32 %v2350_v62  ;;  %v1893_v40 = vadd.f32 %v3736_v32, %v1870_v31  ;;  %v1851_v49 = vadd.f32 %v3821_v7, %v2577_v43 }
 0x190   : > { %v2845_v47 = vpop.eup %2844  ;;  %2858 = vrcp.f32 %v1952_v44  ;;  %v2579_v48 = vpop.f32.mrf.mxu0 }
 0x191   : > { %v2847_v20 = vpop.eup %2846  ;;  %v1997_v2 = vmul.f32 %v2845_v47, %v3780_v21  ;;  %v2351_v30 = vmul.f32 -1.442695, %v1893_v40  ;;  %v1871_v22 = vadd.f32 %v1851_v49, %v3722_v51  ;;  %v2580_v54 = vadd.f32 %v2579_v48, %v2578_v0 }
 0x192   : > { %v1953_v63 = vadd.f32 1.0, %v2847_v20 }
 0x193   : > { %2013 = vst [vmem:[%s3837_s11 + $0x28] sm:$0xff] %v1997_v2  ;;  %2860 = vpow2.f32 %v2351_v30  ;;  %v1894_v24 = vadd.f32 %v3736_v32, %v1871_v22  ;;  %v1854_v55 = vadd.f32 %v2692_v15, %v2580_v54 }
 0x194   : > { %v2849_v50 = vpop.eup %2848  ;;  %2862 = vrcp.f32 %v1953_v63 }
 0x195   : > { %v2851_v7 = vpop.eup %2850  ;;  %v1954_v41 = vadd.f32 1.0, %v2849_v50  ;;  %v2352_v26 = vmul.f32 -1.442695, %v1894_v24  ;;  %v1872_v61 = vadd.f32 %v1854_v55, %v3730_v60 }
 0x196   : > { %v1998_v21 = vmul.f32 %v2851_v7, %v3792_v16 }
 0x197   : > { %2864 = vrcp.f32 %v1954_v41  ;;  %v1895_v51 = vadd.f32 %v3736_v32, %v1872_v61 }
 0x198   : > { %v2853_v23 = vpop.eup %2852  ;;  %2014 = vst [vmem:[%s3837_s11 + $0x30] sm:$0xff] %v1998_v21  ;;  %2866 = vpow2.f32 %v2352_v26 }
 0x199   : > { %v2855_v19 = vpop.eup %2854  ;;  %v1955_v39 = vadd.f32 1.0, %v2853_v23  ;;  %v2353_v15 = vmul.f32 -1.442695, %v1895_v51 }
 0x19a   : > { %v1999_v10 = vmul.f32 %v2855_v19, %v3806_v59 }
 0x19b   : > { %2868 = vrcp.f32 %v1955_v39 }
 0x19c   : > { %v2857_v11 = vpop.eup %2856  ;;  %2015 = vst [vmem:[%s3837_s11 + $0x38] sm:$0xff] %v1999_v10  ;;  %2870 = vpow2.f32 %v2353_v15 }
 0x19d   : > { %v2859_v60 = vpop.eup %2858  ;;  %v1956_v16 = vadd.f32 1.0, %v2857_v11 }
 0x19e   : > { %v2000_v37 = vmul.f32 %v2859_v60, %v3816_v6 }
 0x19f   : > { %2872 = vrcp.f32 %v1956_v16 }
 0x1a0   : > { %v2861_v32 = vpop.eup %2860  ;;  %2016 = vst [vmem:[%s3837_s11 + $0x40] sm:$0xff] %v2000_v37 }
 0x1a1   : > { %v2863_v4 = vpop.eup %2862  ;;  %v1957_v45 = vadd.f32 1.0, %v2861_v32 }
 0x1a2   : > { %v2001_v5 = vmul.f32 %v2863_v4, %v3826_v36 }
 0x1a3   : > { %2874 = vrcp.f32 %v1957_v45 }
 0x1a4   : > { %v2865_v59 = vpop.eup %2864  ;;  %2017 = vst [vmem:[%s3837_s11 + $0x48] sm:$0xff] %v2001_v5 }
 0x1a5   : > { %v2867_v29 = vpop.eup %2866  ;;  %v2002_v18 = vmul.f32 %v2865_v59, %v3840_v33 }
 0x1a6   : > { %v1958_v14 = vadd.f32 1.0, %v2867_v29 }
 0x1a7   : > { %2018 = vst [vmem:[%s3837_s11 + $0x50] sm:$0xff] %v2002_v18 }
 0x1a8   : > { %v2869_v6 = vpop.eup %2868  ;;  %2876 = vrcp.f32 %v1958_v14 }
 0x1a9   : > { %v2871_v1 = vpop.eup %2870  ;;  %v2003_v52 = vmul.f32 %v2869_v6, %v3853_v56 }
 0x1aa   : > { %v1959_v12 = vadd.f32 1.0, %v2871_v1 }
 0x1ab   : > { %2019 = vst [vmem:[%s3837_s11 + $0x58] sm:$0xff] %v2003_v52 }
 0x1ac   : > { %v2873_v36 = vpop.eup %2872  ;;  %2878 = vrcp.f32 %v1959_v12 }
 0x1ad   : > { %v2004_v25 = vmul.f32 %v2873_v36, %v3863_v34 }
 0x1af   : > { %2020 = vst [vmem:[%s3837_s11 + $0x60] sm:$0xff] %v2004_v25 }
 0x1b0   : > { %v2875_v46 = vpop.eup %2874 }
 0x1b1   : > { %v2005_v57 = vmul.f32 %v2875_v46, %v1893_v40 }
 0x1b3   : > { %2021 = vst [vmem:[%s3837_s11 + $0x68] sm:$0xff] %v2005_v57 }
 0x1b5   : > { %v2877_v33 = vpop.eup %2876 }
 0x1b6   : > { %v2006_v28 = vmul.f32 %v2877_v33, %v1894_v24 }
 0x1b8   : > { %2022 = vst [vmem:[%s3837_s11 + $0x70] sm:$0xff] %v2006_v28 }
 0x1b9   : > { %v2879_v17 = vpop.eup %2878 }
 0x1ba   : > { %v2007_v35 = vmul.f32 %v2879_v17, %v1895_v51 }
 0x1bc   : > { %2023 = vst [vmem:[%s3837_s11 + $0x78] sm:$0xff] %v2007_v35 }
 0x1bd PF: > { %s13_s16 = sadd.s32 1, %s2918_s16   ;;  %s3947_s12 = smov %s2910_s14 }
 0x1be   : > { %p10_p7 = scmp.ge.s32.totalorder %s13_s16, 6   ;;  %s3948_s13 = smov %s2914_s15 }
 0x1bf   : > { %s3949_s14 = smov %s3952_s17  ;;  %s3950_s15 = smov %s3956_s18 }
 0x1c0   :  { %12 = sbr.rel (!%p10_p7) target bundleno = 3 (0x3), region = 65 }

</bundles_post_ra>
